<compile_context>
chip_gen: v6e
topology: v6e:2x2x1
jax: 0.10.0
libtpu: 0.0.40
codegen_flags: <defaults>
</compile_context>

<pallas_src>
import functools

import jax
import jax.numpy as jnp
from jax.experimental import pallas as pl
from jax.experimental.pallas import tpu as pltpu


def _round_up(x, m):
    return ((x + m - 1) // m) * m


def _gru_decoder_kernel(x_ref, h0_ref, wih_ref, whh_ref, bgi_ref, bhn_ref,
                        wout_ref, bout_ref,
                        logits_ref, hfinal_ref,
                        gi_sc, h_sc, *, seq_len, chunk, num_chunks):
    """One grid step == one chunk of timesteps; timesteps iterate in-kernel."""
    c = pl.program_id(0)
    Bp, Hp = h0_ref.shape
    cdt = wih_ref.dtype

    # --- chunk-level input projection: one big MXU matmul, biases pre-folded.
    # Row block t*Bp:(t+1)*Bp holds x_t @ W_ih^T + [b_ir+b_hr, b_iz+b_hz, b_in].
    gi_sc[...] = (jnp.dot(x_ref[...], wih_ref[...],
                          preferred_element_type=jnp.float32)
                  + bgi_ref[...])

    # Single remaining per-step bias; broadcast hoisted out of the loop.
    bhn = jnp.broadcast_to(bhn_ref[...], (Bp, Hp))

    def gru_step(i, h):
        base = pl.multiple_of(i * Bp, Bp)
        gi = gi_sc[pl.ds(base, Bp), :]                            # (Bp, 3Hp) f32
        gh = jnp.dot(h.astype(cdt), whh_ref[...],
                     preferred_element_type=jnp.float32)          # (Bp, 3Hp) f32
        # PyTorch gate order r, z, n; each gate is a padded 128-lane block.
        r = jax.nn.sigmoid(gi[:, 0:Hp] + gh[:, 0:Hp])
        z = jax.nn.sigmoid(gi[:, Hp:2 * Hp] + gh[:, Hp:2 * Hp])
        n = jnp.tanh(gi[:, 2 * Hp:3 * Hp] + r * (gh[:, 2 * Hp:3 * Hp] + bhn))
        return (1.0 - z) * n + z * h

    # --- chunk 0: peel global step 0, emit the vocab head, loop the rest -----
    @pl.when(c == 0)
    def _():
        h1 = gru_step(0, h0_ref[...])
        # output[:, 0] of the batch_first GRU == hidden after global step 0.
        logits_ref[...] = (
            jnp.dot(h1.astype(cdt), wout_ref[...],
                    preferred_element_type=jnp.float32)
            + bout_ref[...]).astype(logits_ref.dtype)
        # Chunk 0 is always full (chunk == min(T, time_chunk)) -> static bound.
        h_sc[...] = jax.lax.fori_loop(1, chunk, gru_step, h1,
                                      unroll=max(1, min(8, chunk - 1)))

    # --- remaining chunks -----------------------------------------------------
    if num_chunks > 1:
        @pl.when(c != 0)
        def _():
            if seq_len % chunk == 0:
                h_sc[...] = jax.lax.fori_loop(0, chunk, gru_step, h_sc[...],
                                              unroll=min(8, chunk))
            else:
                steps = jnp.minimum(chunk, seq_len - c * chunk)
                h_sc[...] = jax.lax.fori_loop(0, steps, gru_step, h_sc[...])

    @pl.when(c == pl.num_programs(0) - 1)
    def _():
        hfinal_ref[...] = h_sc[...]


def text_decoder_forward(token_ids, hidden, params, *,
                         compute_dtype=jnp.bfloat16, time_chunk=256):
    """Pallas implementation of TextDecoder.forward(input, hidden)."""
    emb_table = params["embedding"]            # (V, E)
    w_ih = params["w_ih"]                      # (3H, E)
    w_hh = params["w_hh"]                      # (3H, H)
    b_ih = params["b_ih"]                      # (3H,)
    b_hh = params["b_hh"]                      # (3H,)
    w_out = params["w_out"]                    # (O, H)
    b_out = params["b_out"]                    # (O,)

    B, T = token_ids.shape
    if T < 1:
        raise ValueError("TextDecoder requires at least one timestep (output[:, 0]).")
    E = emb_table.shape[1]
    H = w_hh.shape[1]
    O = w_out.shape[0]

    # TPU-dense padded sizes: batch -> sublanes(8), H/O -> lanes(128), E -> 8.
    Bp = _round_up(B, 8)
    Hp = _round_up(H, 128)
    Op = _round_up(O, 128)
    Ep = _round_up(E, 8)

    # Time chunking: grid walks chunks, fori_loop walks timesteps in-kernel.
    # gi scratch is Tc*Bp*3Hp*4 B (3 MiB at Tc=256, Bp=8, Hp=128): fits the
    # 32 MiB scoped budget on v5e/v6e/v7x with plenty of headroom.
    Tc = min(T, time_chunk)
    num_chunks = int(pl.cdiv(T, Tc))
    Tpad = num_chunks * Tc

    # --- weights: gate-blocked zero padding so lane slices stay 128-aligned ---
    def pad_gate_weight(w, din, dinp):         # (3H, din) -> (dinp, 3Hp)
        w3 = w.reshape(3, H, din)
        w3 = jnp.pad(w3, ((0, 0), (0, Hp - H), (0, dinp - din)))
        return jnp.transpose(w3, (2, 0, 1)).reshape(dinp, 3 * Hp)

    wih_t = pad_gate_weight(w_ih, E, Ep).astype(compute_dtype)       # (Ep, 3Hp)
    whh_t = pad_gate_weight(w_hh, H, Hp).astype(compute_dtype)       # (Hp, 3Hp)
    wout_t = jnp.pad(w_out, ((0, Op - O), (0, Hp - H))).T.astype(compute_dtype)  # (Hp, Op)
    bout2 = jnp.pad(b_out, (0, Op - O)).reshape(1, Op).astype(jnp.float32)

    # --- biases: fold (b_ih + b_hh) into r/z; keep b_hh_n separate (PyTorch) --
    b_ih3 = b_ih.reshape(3, H)
    b_hh3 = b_hh.reshape(3, H)
    b_gi3 = jnp.stack([b_ih3[0] + b_hh3[0],    # r
                       b_ih3[1] + b_hh3[1],    # z
                       b_ih3[2]])              # n (input-side bias only)
    b_gi = jnp.pad(b_gi3, ((0, 0), (0, Hp - H))).reshape(1, 3 * Hp).astype(jnp.float32)
    b_hn = jnp.pad(b_hh3[2], (0, Hp - H)).reshape(1, Hp).astype(jnp.float32)

    # --- activations: gather time-major, flatten (T, B) onto sublane rows -----
    emb_p = jnp.pad(emb_table, ((0, 0), (0, Ep - E)))
    tok_p = jnp.pad(token_ids, ((0, Bp - B), (0, Tpad - T)))    # pad token 0 is a valid index
    x_tm = jnp.take(emb_p, tok_p.T, axis=0)                     # (Tpad, Bp, Ep)
    x_tm = x_tm.reshape(Tpad * Bp, Ep).astype(compute_dtype)    # (Tpad*Bp, Ep)

    h0 = jnp.pad(hidden[0], ((0, Bp - B), (0, Hp - H))).astype(jnp.float32)  # (Bp, Hp)

    kernel = functools.partial(_gru_decoder_kernel,
                               seq_len=T, chunk=Tc, num_chunks=num_chunks)

    logits_p, hfinal_p = pl.pallas_call(
        kernel,
        out_shape=(
            jax.ShapeDtypeStruct((Bp, Op), jnp.float32),
            jax.ShapeDtypeStruct((Bp, Hp), jnp.float32),
        ),
        grid_spec=pltpu.PrefetchScalarGridSpec(
            num_scalar_prefetch=0,
            grid=(num_chunks,),
            in_specs=[
                pl.BlockSpec((Tc * Bp, Ep), lambda c: (c, 0)),     # x chunk (time-major rows)
                pl.BlockSpec((Bp, Hp), lambda c: (0, 0)),          # h0
                pl.BlockSpec((Ep, 3 * Hp), lambda c: (0, 0)),      # W_ih^T (gate-blocked)
                pl.BlockSpec((Hp, 3 * Hp), lambda c: (0, 0)),      # W_hh^T (gate-blocked)
                pl.BlockSpec((1, 3 * Hp), lambda c: (0, 0)),       # folded gi bias
                pl.BlockSpec((1, Hp), lambda c: (0, 0)),           # b_hh (n gate)
                pl.BlockSpec((Hp, Op), lambda c: (0, 0)),          # W_out^T
                pl.BlockSpec((1, Op), lambda c: (0, 0)),           # b_out
            ],
            out_specs=(
                pl.BlockSpec((Bp, Op), lambda c: (0, 0)),
                pl.BlockSpec((Bp, Hp), lambda c: (0, 0)),
            ),
            scratch_shapes=[
                pltpu.VMEM((Tc * Bp, 3 * Hp), jnp.float32),   # per-chunk input projections
                pltpu.VMEM((Bp, Hp), jnp.float32),            # running hidden carry
            ],
        ),
        compiler_params=pltpu.CompilerParams(
            dimension_semantics=("arbitrary",),      # time chunks are a serial carry
            vmem_limit_bytes=32 * 1024 * 1024,       # explicit budget (fits v5e/v6e/v7x)
        ),
    )(x_tm, h0, wih_t, whh_t, b_gi, b_hn, wout_t, bout2)

    logits = logits_p[:B, :O]
    h_final = hfinal_p[:B, :H]
    return logits, h_final[None, :, :]   # hidden returned as (1, B, H)


def reference_forward(token_ids, hidden, params):
    """Pure-JAX reference (PyTorch GRU semantics) for correctness check."""
    emb = jnp.take(params["embedding"], token_ids, axis=0)   # (B, T, E)
    H = params["w_hh"].shape[1]

    def step(h, x_t):
        gi = x_t @ params["w_ih"].T + params["b_ih"]
        gh = h @ params["w_hh"].T + params["b_hh"]
        i_r, i_z, i_n = gi[:, :H], gi[:, H:2 * H], gi[:, 2 * H:]
        h_r, h_z, h_n = gh[:, :H], gh[:, H:2 * H], gh[:, 2 * H:]
        r = jax.nn.sigmoid(i_r + h_r)
        z = jax.nn.sigmoid(i_z + h_z)
        n = jnp.tanh(i_n + r * h_n)
        h_new = (1.0 - z) * n + z * h
        return h_new, h_new

    h_final, outs = jax.lax.scan(step, hidden[0], jnp.transpose(emb, (1, 0, 2)))
    out0 = outs[0]                                            # output[:, 0]
    logits = out0 @ params["w_out"].T + params["b_out"]
    return logits, h_final[None, :, :]


if __name__ == "__main__":
    # Small, deterministic shapes consistent with the module.
    B, T = 2, 8            # batch, sequence length
    V, E = 50, 16          # vocab size, embedding_dim
    H = 32                 # hidden_size
    O = V                  # output_size (vocab logits)

    key = jax.random.PRNGKey(0)
    keys = jax.random.split(key, 9)
    bound = 1.0 / jnp.sqrt(H)

    params = {
        "embedding": jax.random.normal(keys[0], (V, E), jnp.float32),
        "w_ih": jax.random.uniform(keys[1], (3 * H, E), jnp.float32, -bound, bound),
        "w_hh": jax.random.uniform(keys[2], (3 * H, H), jnp.float32, -bound, bound),
        "b_ih": jax.random.uniform(keys[3], (3 * H,), jnp.float32, -bound, bound),
        "b_hh": jax.random.uniform(keys[4], (3 * H,), jnp.float32, -bound, bound),
        "w_out": jax.random.uniform(keys[5], (O, H), jnp.float32, -bound, bound),
        "b_out": jax.random.uniform(keys[6], (O,), jnp.float32, -bound, bound),
    }

    token_ids = jax.random.randint(keys[7], (B, T), 0, V, dtype=jnp.int32)
    hidden0 = jnp.zeros((1, B, H), jnp.float32)   # TextDecoder.initHidden semantics

    ref_logits, ref_hidden = reference_forward(token_ids, hidden0, params)

    # f32 matmul path: tight match to the reference.
    logits, hidden_out = text_decoder_forward(
        token_ids, hidden0, params, compute_dtype=jnp.float32)
    logits = jax.block_until_ready(logits)
    hidden_out = jax.block_until_ready(hidden_out)

    assert logits.shape == (B, O) and hidden_out.shape == (1, B, H)
    assert jnp.allclose(logits, ref_logits, atol=1e-4, rtol=1e-4)
    assert jnp.allclose(hidden_out, ref_hidden, atol=1e-4, rtol=1e-4)

    # Default bf16-matmul path (MXU-friendly on v6e/v7x; gate math stays f32).
    logits_bf, hidden_bf = text_decoder_forward(token_ids, hidden0, params)
    logits_bf = jax.block_until_ready(logits_bf)
    hidden_bf = jax.block_until_ready(hidden_bf)
    assert jnp.allclose(logits_bf, ref_logits, atol=1e-1, rtol=1e-1)
    assert jnp.allclose(hidden_bf, ref_hidden, atol=1e-1, rtol=1e-1)

    print("KERNEL_OK")
</pallas_src>

<mosaic_0001>
module attributes {stable_mosaic.version = 11 : i64} {
  func.func @_gru_decoder_kernel(%arg0: i32, %arg1: memref<64x16xf32, #tpu.memory_space<vmem>>, %arg2: memref<8x128xf32, #tpu.memory_space<vmem>>, %arg3: memref<16x384xf32, #tpu.memory_space<vmem>>, %arg4: memref<128x384xf32, #tpu.memory_space<vmem>>, %arg5: memref<1x384xf32, #tpu.memory_space<vmem>>, %arg6: memref<1x128xf32, #tpu.memory_space<vmem>>, %arg7: memref<128x128xf32, #tpu.memory_space<vmem>>, %arg8: memref<1x128xf32, #tpu.memory_space<vmem>>, %arg9: memref<8x128xf32, #tpu.memory_space<vmem>>, %arg10: memref<8x128xf32, #tpu.memory_space<vmem>>, %arg11: memref<64x384xf32, #tpu.memory_space<vmem>>, %arg12: memref<8x128xf32, #tpu.memory_space<vmem>>) attributes {dimension_semantics = [#tpu.dimension_semantics<arbitrary>], iteration_bounds = array<i64: 1>, scalar_prefetch = 0 : i64, scratch_operands = 2 : i64, tpu.core_type = #tpu.core_type<tc>, window_params = [{transform_indices = @transform_0, window_bounds = array<i64: 64, 16>}, {pipeline_mode = #tpu.pipeline_mode<synchronous>, transform_indices = @transform_1, window_bounds = array<i64: 8, 128>}, {pipeline_mode = #tpu.pipeline_mode<synchronous>, transform_indices = @transform_2, window_bounds = array<i64: 16, 384>}, {pipeline_mode = #tpu.pipeline_mode<synchronous>, transform_indices = @transform_3, window_bounds = array<i64: 128, 384>}, {pipeline_mode = #tpu.pipeline_mode<synchronous>, transform_indices = @transform_4, window_bounds = array<i64: 1, 384>}, {pipeline_mode = #tpu.pipeline_mode<synchronous>, transform_indices = @transform_5, window_bounds = array<i64: 1, 128>}, {pipeline_mode = #tpu.pipeline_mode<synchronous>, transform_indices = @transform_6, window_bounds = array<i64: 128, 128>}, {pipeline_mode = #tpu.pipeline_mode<synchronous>, transform_indices = @transform_7, window_bounds = array<i64: 1, 128>}, {pipeline_mode = #tpu.pipeline_mode<synchronous>, transform_indices = @transform_8, window_bounds = array<i64: 8, 128>}, {pipeline_mode = #tpu.pipeline_mode<synchronous>, transform_indices = @transform_9, window_bounds = array<i64: 8, 128>}]} {
    %c0 = arith.constant 0 : index
    %c0_0 = arith.constant 0 : index
    %0 = vector.load %arg1[%c0, %c0_0] : memref<64x16xf32, #tpu.memory_space<vmem>>, vector<64x16xf32>
    %c0_1 = arith.constant 0 : index
    %c0_2 = arith.constant 0 : index
    %1 = vector.load %arg3[%c0_1, %c0_2] : memref<16x384xf32, #tpu.memory_space<vmem>>, vector<16x384xf32>
    %cst = arith.constant dense<0.000000e+00> : vector<64x384xf32>
    %2 = tpu.matmul %0, %1, %cst {dimension_numbers = #tpu.dot_dimension_numbers<[1], [0], [0], [1], [0, 0, 1, 1], [], []>} : vector<64x16xf32>, vector<16x384xf32>, vector<64x384xf32> -> vector<64x384xf32>
    %c0_3 = arith.constant 0 : index
    %c0_4 = arith.constant 0 : index
    %3 = vector.load %arg5[%c0_3, %c0_4] : memref<1x384xf32, #tpu.memory_space<vmem>>, vector<1x384xf32>
    %4 = vector.broadcast %3 : vector<1x384xf32> to vector<64x384xf32>
    %5 = arith.addf %2, %4 : vector<64x384xf32>
    %c0_5 = arith.constant 0 : index
    %c0_6 = arith.constant 0 : index
    %6 = vector.load %arg11[%c0_5, %c0_6] : memref<64x384xf32, #tpu.memory_space<vmem>>, vector<64x384xf32>
    tpu.vector_store %arg11[%c0_5, %c0_6], %5 {strides = array<i32>} : memref<64x384xf32, #tpu.memory_space<vmem>>, vector<64x384xf32>,
    %c0_7 = arith.constant 0 : index
    %c0_8 = arith.constant 0 : index
    %7 = vector.load %arg6[%c0_7, %c0_8] : memref<1x128xf32, #tpu.memory_space<vmem>>, vector<1x128xf32>
    %8 = vector.shape_cast %7 : vector<1x128xf32> to vector<1x128xf32>
    %9 = vector.broadcast %8 : vector<1x128xf32> to vector<8x128xf32>
    %c0_i32 = arith.constant 0 : i32
    %10 = arith.cmpi eq, %arg0, %c0_i32 : i32
    %11 = arith.extui %10 : i1 to i32
    %c0_i32_9 = arith.constant 0 : i32
    %12 = arith.cmpi ne, %11, %c0_i32_9 : i32
    scf.if %12 {
      %c0_12 = arith.constant 0 : index
      %c0_13 = arith.constant 0 : index
      %16 = vector.load %arg2[%c0_12, %c0_13] : memref<8x128xf32, #tpu.memory_space<vmem>>, vector<8x128xf32>
      %c0_i32_14 = arith.constant 0 : i32
      %17 = tpu.assume_multiple %c0_i32_14, 8 : i32
      %18 = arith.index_cast %17 : i32 to index
      %c0_15 = arith.constant 0 : index
      %19 = vector.load %arg11[%18, %c0_15] : memref<64x384xf32, #tpu.memory_space<vmem>>, vector<8x384xf32>
      %c0_16 = arith.constant 0 : index
      %c0_17 = arith.constant 0 : index
      %20 = vector.load %arg4[%c0_16, %c0_17] : memref<128x384xf32, #tpu.memory_space<vmem>>, vector<128x384xf32>
      %cst_18 = arith.constant dense<0.000000e+00> : vector<8x384xf32>
      %21 = tpu.matmul %16, %20, %cst_18 {dimension_numbers = #tpu.dot_dimension_numbers<[1], [0], [0], [1], [0, 0, 1, 1], [], []>} : vector<8x128xf32>, vector<128x384xf32>, vector<8x384xf32> -> vector<8x384xf32>
      %22 = vector.extract_strided_slice %19 {offsets = [0, 0], sizes = [8, 128], strides = [1, 1]} : vector<8x384xf32> to vector<8x128xf32>
      %23 = vector.extract_strided_slice %21 {offsets = [0, 0], sizes = [8, 128], strides = [1, 1]} : vector<8x384xf32> to vector<8x128xf32>
      %24 = arith.addf %22, %23 : vector<8x128xf32>
      %25 = arith.negf %24 : vector<8x128xf32>
      %26 = math.exp %25 : vector<8x128xf32>
      %cst_19 = arith.constant 1.000000e+00 : f32
      %27 = vector.broadcast %cst_19 : f32 to vector<8x128xf32>
      %28 = arith.addf %27, %26 : vector<8x128xf32>
      %29 = arith.divf %27, %28 : vector<8x128xf32>
      %30 = vector.extract_strided_slice %19 {offsets = [0, 128], sizes = [8, 128], strides = [1, 1]} : vector<8x384xf32> to vector<8x128xf32>
      %31 = vector.extract_strided_slice %21 {offsets = [0, 128], sizes = [8, 128], strides = [1, 1]} : vector<8x384xf32> to vector<8x128xf32>
      %32 = arith.addf %30, %31 : vector<8x128xf32>
      %33 = arith.negf %32 : vector<8x128xf32>
      %34 = math.exp %33 : vector<8x128xf32>
      %cst_20 = arith.constant 1.000000e+00 : f32
      %35 = vector.broadcast %cst_20 : f32 to vector<8x128xf32>
      %36 = arith.addf %35, %34 : vector<8x128xf32>
      %37 = arith.divf %35, %36 : vector<8x128xf32>
      %38 = vector.extract_strided_slice %19 {offsets = [0, 256], sizes = [8, 128], strides = [1, 1]} : vector<8x384xf32> to vector<8x128xf32>
      %39 = vector.extract_strided_slice %21 {offsets = [0, 256], sizes = [8, 128], strides = [1, 1]} : vector<8x384xf32> to vector<8x128xf32>
      %40 = arith.addf %39, %9 : vector<8x128xf32>
      %41 = arith.mulf %29, %40 : vector<8x128xf32>
      %42 = arith.addf %38, %41 : vector<8x128xf32>
      %43 = math.tanh %42 : vector<8x128xf32>
      %cst_21 = arith.constant 1.000000e+00 : f32
      %44 = vector.broadcast %cst_21 : f32 to vector<8x128xf32>
      %45 = arith.subf %44, %37 : vector<8x128xf32>
      %46 = arith.mulf %45, %43 : vector<8x128xf32>
      %47 = arith.mulf %37, %16 : vector<8x128xf32>
      %48 = arith.addf %46, %47 : vector<8x128xf32>
      %c0_22 = arith.constant 0 : index
      %c0_23 = arith.constant 0 : index
      %49 = vector.load %arg7[%c0_22, %c0_23] : memref<128x128xf32, #tpu.memory_space<vmem>>, vector<128x128xf32>
      %cst_24 = arith.constant dense<0.000000e+00> : vector<8x128xf32>
      %50 = tpu.matmul %48, %49, %cst_24 {dimension_numbers = #tpu.dot_dimension_numbers<[1], [0], [0], [1], [0, 0, 1, 1], [], []>} : vector<8x128xf32>, vector<128x128xf32>, vector<8x128xf32> -> vector<8x128xf32>
      %c0_25 = arith.constant 0 : index
      %c0_26 = arith.constant 0 : index
      %51 = vector.load %arg8[%c0_25, %c0_26] : memref<1x128xf32, #tpu.memory_space<vmem>>, vector<1x128xf32>
      %52 = vector.broadcast %51 : vector<1x128xf32> to vector<8x128xf32>
      %53 = arith.addf %50, %52 : vector<8x128xf32>
      %c0_27 = arith.constant 0 : index
      %c0_28 = arith.constant 0 : index
      %54 = vector.load %arg9[%c0_27, %c0_28] : memref<8x128xf32, #tpu.memory_space<vmem>>, vector<8x128xf32>
      tpu.vector_store %arg9[%c0_27, %c0_28], %53 {strides = array<i32>} : memref<8x128xf32, #tpu.memory_space<vmem>>, vector<8x128xf32>,
      %c1_i32 = arith.constant 1 : i32
      %c8_i32 = arith.constant 8 : i32
      %55 = arith.muli %c1_i32, %c8_i32 : i32
      %56 = tpu.assume_multiple %55, 8 : i32
      %57 = arith.index_cast %56 : i32 to index
      %c0_29 = arith.constant 0 : index
      %58 = vector.load %arg11[%57, %c0_29] : memref<64x384xf32, #tpu.memory_space<vmem>>, vector<8x384xf32>
      %c0_30 = arith.constant 0 : index
      %c0_31 = arith.constant 0 : index
      %59 = vector.load %arg4[%c0_30, %c0_31] : memref<128x384xf32, #tpu.memory_space<vmem>>, vector<128x384xf32>
      %cst_32 = arith.constant dense<0.000000e+00> : vector<8x384xf32>
      %60 = tpu.matmul %48, %59, %cst_32 {dimension_numbers = #tpu.dot_dimension_numbers<[1], [0], [0], [1], [0, 0, 1, 1], [], []>} : vector<8x128xf32>, vector<128x384xf32>, vector<8x384xf32> -> vector<8x384xf32>
      %61 = vector.extract_strided_slice %58 {offsets = [0, 0], sizes = [8, 128], strides = [1, 1]} : vector<8x384xf32> to vector<8x128xf32>
      %62 = vector.extract_strided_slice %60 {offsets = [0, 0], sizes = [8, 128], strides = [1, 1]} : vector<8x384xf32> to vector<8x128xf32>
      %63 = arith.addf %61, %62 : vector<8x128xf32>
      %64 = arith.negf %63 : vector<8x128xf32>
      %65 = math.exp %64 : vector<8x128xf32>
      %cst_33 = arith.constant 1.000000e+00 : f32
      %66 = vector.broadcast %cst_33 : f32 to vector<8x128xf32>
      %67 = arith.addf %66, %65 : vector<8x128xf32>
      %68 = arith.divf %66, %67 : vector<8x128xf32>
      %69 = vector.extract_strided_slice %58 {offsets = [0, 128], sizes = [8, 128], strides = [1, 1]} : vector<8x384xf32> to vector<8x128xf32>
      %70 = vector.extract_strided_slice %60 {offsets = [0, 128], sizes = [8, 128], strides = [1, 1]} : vector<8x384xf32> to vector<8x128xf32>
      %71 = arith.addf %69, %70 : vector<8x128xf32>
      %72 = arith.negf %71 : vector<8x128xf32>
      %73 = math.exp %72 : vector<8x128xf32>
      %cst_34 = arith.constant 1.000000e+00 : f32
      %74 = vector.broadcast %cst_34 : f32 to vector<8x128xf32>
      %75 = arith.addf %74, %73 : vector<8x128xf32>
      %76 = arith.divf %74, %75 : vector<8x128xf32>
      %77 = vector.extract_strided_slice %58 {offsets = [0, 256], sizes = [8, 128], strides = [1, 1]} : vector<8x384xf32> to vector<8x128xf32>
      %78 = vector.extract_strided_slice %60 {offsets = [0, 256], sizes = [8, 128], strides = [1, 1]} : vector<8x384xf32> to vector<8x128xf32>
      %79 = arith.addf %78, %9 : vector<8x128xf32>
      %80 = arith.mulf %68, %79 : vector<8x128xf32>
      %81 = arith.addf %77, %80 : vector<8x128xf32>
      %82 = math.tanh %81 : vector<8x128xf32>
      %cst_35 = arith.constant 1.000000e+00 : f32
      %83 = vector.broadcast %cst_35 : f32 to vector<8x128xf32>
      %84 = arith.subf %83, %76 : vector<8x128xf32>
      %85 = arith.mulf %84, %82 : vector<8x128xf32>
      %86 = arith.mulf %76, %48 : vector<8x128xf32>
      %87 = arith.addf %85, %86 : vector<8x128xf32>
      %c2_i32 = arith.constant 2 : i32
      %c8_i32_36 = arith.constant 8 : i32
      %88 = arith.muli %c2_i32, %c8_i32_36 : i32
      %89 = tpu.assume_multiple %88, 8 : i32
      %90 = arith.index_cast %89 : i32 to index
      %c0_37 = arith.constant 0 : index
      %91 = vector.load %arg11[%90, %c0_37] : memref<64x384xf32, #tpu.memory_space<vmem>>, vector<8x384xf32>
      %c0_38 = arith.constant 0 : index
      %c0_39 = arith.constant 0 : index
      %92 = vector.load %arg4[%c0_38, %c0_39] : memref<128x384xf32, #tpu.memory_space<vmem>>, vector<128x384xf32>
      %cst_40 = arith.constant dense<0.000000e+00> : vector<8x384xf32>
      %93 = tpu.matmul %87, %92, %cst_40 {dimension_numbers = #tpu.dot_dimension_numbers<[1], [0], [0], [1], [0, 0, 1, 1], [], []>} : vector<8x128xf32>, vector<128x384xf32>, vector<8x384xf32> -> vector<8x384xf32>
      %94 = vector.extract_strided_slice %91 {offsets = [0, 0], sizes = [8, 128], strides = [1, 1]} : vector<8x384xf32> to vector<8x128xf32>
      %95 = vector.extract_strided_slice %93 {offsets = [0, 0], sizes = [8, 128], strides = [1, 1]} : vector<8x384xf32> to vector<8x128xf32>
      %96 = arith.addf %94, %95 : vector<8x128xf32>
      %97 = arith.negf %96 : vector<8x128xf32>
      %98 = math.exp %97 : vector<8x128xf32>
      %cst_41 = arith.constant 1.000000e+00 : f32
      %99 = vector.broadcast %cst_41 : f32 to vector<8x128xf32>
      %100 = arith.addf %99, %98 : vector<8x128xf32>
      %101 = arith.divf %99, %100 : vector<8x128xf32>
      %102 = vector.extract_strided_slice %91 {offsets = [0, 128], sizes = [8, 128], strides = [1, 1]} : vector<8x384xf32> to vector<8x128xf32>
      %103 = vector.extract_strided_slice %93 {offsets = [0, 128], sizes = [8, 128], strides = [1, 1]} : vector<8x384xf32> to vector<8x128xf32>
      %104 = arith.addf %102, %103 : vector<8x128xf32>
      %105 = arith.negf %104 : vector<8x128xf32>
      %106 = math.exp %105 : vector<8x128xf32>
      %cst_42 = arith.constant 1.000000e+00 : f32
      %107 = vector.broadcast %cst_42 : f32 to vector<8x128xf32>
      %108 = arith.addf %107, %106 : vector<8x128xf32>
      %109 = arith.divf %107, %108 : vector<8x128xf32>
      %110 = vector.extract_strided_slice %91 {offsets = [0, 256], sizes = [8, 128], strides = [1, 1]} : vector<8x384xf32> to vector<8x128xf32>
      %111 = vector.extract_strided_slice %93 {offsets = [0, 256], sizes = [8, 128], strides = [1, 1]} : vector<8x384xf32> to vector<8x128xf32>
      %112 = arith.addf %111, %9 : vector<8x128xf32>
      %113 = arith.mulf %101, %112 : vector<8x128xf32>
      %114 = arith.addf %110, %113 : vector<8x128xf32>
      %115 = math.tanh %114 : vector<8x128xf32>
      %cst_43 = arith.constant 1.000000e+00 : f32
      %116 = vector.broadcast %cst_43 : f32 to vector<8x128xf32>
      %117 = arith.subf %116, %109 : vector<8x128xf32>
      %118 = arith.mulf %117, %115 : vector<8x128xf32>
      %119 = arith.mulf %109, %87 : vector<8x128xf32>
      %120 = arith.addf %118, %119 : vector<8x128xf32>
      %c3_i32 = arith.constant 3 : i32
      %c8_i32_44 = arith.constant 8 : i32
      %121 = arith.muli %c3_i32, %c8_i32_44 : i32
      %122 = tpu.assume_multiple %121, 8 : i32
      %123 = arith.index_cast %122 : i32 to index
      %c0_45 = arith.constant 0 : index
      %124 = vector.load %arg11[%123, %c0_45] : memref<64x384xf32, #tpu.memory_space<vmem>>, vector<8x384xf32>
      %c0_46 = arith.constant 0 : index
      %c0_47 = arith.constant 0 : index
      %125 = vector.load %arg4[%c0_46, %c0_47] : memref<128x384xf32, #tpu.memory_space<vmem>>, vector<128x384xf32>
      %cst_48 = arith.constant dense<0.000000e+00> : vector<8x384xf32>
      %126 = tpu.matmul %120, %125, %cst_48 {dimension_numbers = #tpu.dot_dimension_numbers<[1], [0], [0], [1], [0, 0, 1, 1], [], []>} : vector<8x128xf32>, vector<128x384xf32>, vector<8x384xf32> -> vector<8x384xf32>
      %127 = vector.extract_strided_slice %124 {offsets = [0, 0], sizes = [8, 128], strides = [1, 1]} : vector<8x384xf32> to vector<8x128xf32>
      %128 = vector.extract_strided_slice %126 {offsets = [0, 0], sizes = [8, 128], strides = [1, 1]} : vector<8x384xf32> to vector<8x128xf32>
      %129 = arith.addf %127, %128 : vector<8x128xf32>
      %130 = arith.negf %129 : vector<8x128xf32>
      %131 = math.exp %130 : vector<8x128xf32>
      %cst_49 = arith.constant 1.000000e+00 : f32
      %132 = vector.broadcast %cst_49 : f32 to vector<8x128xf32>
      %133 = arith.addf %132, %131 : vector<8x128xf32>
      %134 = arith.divf %132, %133 : vector<8x128xf32>
      %135 = vector.extract_strided_slice %124 {offsets = [0, 128], sizes = [8, 128], strides = [1, 1]} : vector<8x384xf32> to vector<8x128xf32>
      %136 = vector.extract_strided_slice %126 {offsets = [0, 128], sizes = [8, 128], strides = [1, 1]} : vector<8x384xf32> to vector<8x128xf32>
      %137 = arith.addf %135, %136 : vector<8x128xf32>
      %138 = arith.negf %137 : vector<8x128xf32>
      %139 = math.exp %138 : vector<8x128xf32>
      %cst_50 = arith.constant 1.000000e+00 : f32
      %140 = vector.broadcast %cst_50 : f32 to vector<8x128xf32>
      %141 = arith.addf %140, %139 : vector<8x128xf32>
      %142 = arith.divf %140, %141 : vector<8x128xf32>
      %143 = vector.extract_strided_slice %124 {offsets = [0, 256], sizes = [8, 128], strides = [1, 1]} : vector<8x384xf32> to vector<8x128xf32>
      %144 = vector.extract_strided_slice %126 {offsets = [0, 256], sizes = [8, 128], strides = [1, 1]} : vector<8x384xf32> to vector<8x128xf32>
      %145 = arith.addf %144, %9 : vector<8x128xf32>
      %146 = arith.mulf %134, %145 : vector<8x128xf32>
      %147 = arith.addf %143, %146 : vector<8x128xf32>
      %148 = math.tanh %147 : vector<8x128xf32>
      %cst_51 = arith.constant 1.000000e+00 : f32
      %149 = vector.broadcast %cst_51 : f32 to vector<8x128xf32>
      %150 = arith.subf %149, %142 : vector<8x128xf32>
      %151 = arith.mulf %150, %148 : vector<8x128xf32>
      %152 = arith.mulf %142, %120 : vector<8x128xf32>
      %153 = arith.addf %151, %152 : vector<8x128xf32>
      %c4_i32 = arith.constant 4 : i32
      %c8_i32_52 = arith.constant 8 : i32
      %154 = arith.muli %c4_i32, %c8_i32_52 : i32
      %155 = tpu.assume_multiple %154, 8 : i32
      %156 = arith.index_cast %155 : i32 to index
      %c0_53 = arith.constant 0 : index
      %157 = vector.load %arg11[%156, %c0_53] : memref<64x384xf32, #tpu.memory_space<vmem>>, vector<8x384xf32>
      %c0_54 = arith.constant 0 : index
      %c0_55 = arith.constant 0 : index
      %158 = vector.load %arg4[%c0_54, %c0_55] : memref<128x384xf32, #tpu.memory_space<vmem>>, vector<128x384xf32>
      %cst_56 = arith.constant dense<0.000000e+00> : vector<8x384xf32>
      %159 = tpu.matmul %153, %158, %cst_56 {dimension_numbers = #tpu.dot_dimension_numbers<[1], [0], [0], [1], [0, 0, 1, 1], [], []>} : vector<8x128xf32>, vector<128x384xf32>, vector<8x384xf32> -> vector<8x384xf32>
      %160 = vector.extract_strided_slice %157 {offsets = [0, 0], sizes = [8, 128], strides = [1, 1]} : vector<8x384xf32> to vector<8x128xf32>
      %161 = vector.extract_strided_slice %159 {offsets = [0, 0], sizes = [8, 128], strides = [1, 1]} : vector<8x384xf32> to vector<8x128xf32>
      %162 = arith.addf %160, %161 : vector<8x128xf32>
      %163 = arith.negf %162 : vector<8x128xf32>
      %164 = math.exp %163 : vector<8x128xf32>
      %cst_57 = arith.constant 1.000000e+00 : f32
      %165 = vector.broadcast %cst_57 : f32 to vector<8x128xf32>
      %166 = arith.addf %165, %164 : vector<8x128xf32>
      %167 = arith.divf %165, %166 : vector<8x128xf32>
      %168 = vector.extract_strided_slice %157 {offsets = [0, 128], sizes = [8, 128], strides = [1, 1]} : vector<8x384xf32> to vector<8x128xf32>
      %169 = vector.extract_strided_slice %159 {offsets = [0, 128], sizes = [8, 128], strides = [1, 1]} : vector<8x384xf32> to vector<8x128xf32>
      %170 = arith.addf %168, %169 : vector<8x128xf32>
      %171 = arith.negf %170 : vector<8x128xf32>
      %172 = math.exp %171 : vector<8x128xf32>
      %cst_58 = arith.constant 1.000000e+00 : f32
      %173 = vector.broadcast %cst_58 : f32 to vector<8x128xf32>
      %174 = arith.addf %173, %172 : vector<8x128xf32>
      %175 = arith.divf %173, %174 : vector<8x128xf32>
      %176 = vector.extract_strided_slice %157 {offsets = [0, 256], sizes = [8, 128], strides = [1, 1]} : vector<8x384xf32> to vector<8x128xf32>
      %177 = vector.extract_strided_slice %159 {offsets = [0, 256], sizes = [8, 128], strides = [1, 1]} : vector<8x384xf32> to vector<8x128xf32>
      %178 = arith.addf %177, %9 : vector<8x128xf32>
      %179 = arith.mulf %167, %178 : vector<8x128xf32>
      %180 = arith.addf %176, %179 : vector<8x128xf32>
      %181 = math.tanh %180 : vector<8x128xf32>
      %cst_59 = arith.constant 1.000000e+00 : f32
      %182 = vector.broadcast %cst_59 : f32 to vector<8x128xf32>
      %183 = arith.subf %182, %175 : vector<8x128xf32>
      %184 = arith.mulf %183, %181 : vector<8x128xf32>
      %185 = arith.mulf %175, %153 : vector<8x128xf32>
      %186 = arith.addf %184, %185 : vector<8x128xf32>
      %c5_i32 = arith.constant 5 : i32
      %c8_i32_60 = arith.constant 8 : i32
      %187 = arith.muli %c5_i32, %c8_i32_60 : i32
      %188 = tpu.assume_multiple %187, 8 : i32
      %189 = arith.index_cast %188 : i32 to index
      %c0_61 = arith.constant 0 : index
      %190 = vector.load %arg11[%189, %c0_61] : memref<64x384xf32, #tpu.memory_space<vmem>>, vector<8x384xf32>
      %c0_62 = arith.constant 0 : index
      %c0_63 = arith.constant 0 : index
      %191 = vector.load %arg4[%c0_62, %c0_63] : memref<128x384xf32, #tpu.memory_space<vmem>>, vector<128x384xf32>
      %cst_64 = arith.constant dense<0.000000e+00> : vector<8x384xf32>
      %192 = tpu.matmul %186, %191, %cst_64 {dimension_numbers = #tpu.dot_dimension_numbers<[1], [0], [0], [1], [0, 0, 1, 1], [], []>} : vector<8x128xf32>, vector<128x384xf32>, vector<8x384xf32> -> vector<8x384xf32>
      %193 = vector.extract_strided_slice %190 {offsets = [0, 0], sizes = [8, 128], strides = [1, 1]} : vector<8x384xf32> to vector<8x128xf32>
      %194 = vector.extract_strided_slice %192 {offsets = [0, 0], sizes = [8, 128], strides = [1, 1]} : vector<8x384xf32> to vector<8x128xf32>
      %195 = arith.addf %193, %194 : vector<8x128xf32>
      %196 = arith.negf %195 : vector<8x128xf32>
      %197 = math.exp %196 : vector<8x128xf32>
      %cst_65 = arith.constant 1.000000e+00 : f32
      %198 = vector.broadcast %cst_65 : f32 to vector<8x128xf32>
      %199 = arith.addf %198, %197 : vector<8x128xf32>
      %200 = arith.divf %198, %199 : vector<8x128xf32>
      %201 = vector.extract_strided_slice %190 {offsets = [0, 128], sizes = [8, 128], strides = [1, 1]} : vector<8x384xf32> to vector<8x128xf32>
      %202 = vector.extract_strided_slice %192 {offsets = [0, 128], sizes = [8, 128], strides = [1, 1]} : vector<8x384xf32> to vector<8x128xf32>
      %203 = arith.addf %201, %202 : vector<8x128xf32>
      %204 = arith.negf %203 : vector<8x128xf32>
      %205 = math.exp %204 : vector<8x128xf32>
      %cst_66 = arith.constant 1.000000e+00 : f32
      %206 = vector.broadcast %cst_66 : f32 to vector<8x128xf32>
      %207 = arith.addf %206, %205 : vector<8x128xf32>
      %208 = arith.divf %206, %207 : vector<8x128xf32>
      %209 = vector.extract_strided_slice %190 {offsets = [0, 256], sizes = [8, 128], strides = [1, 1]} : vector<8x384xf32> to vector<8x128xf32>
      %210 = vector.extract_strided_slice %192 {offsets = [0, 256], sizes = [8, 128], strides = [1, 1]} : vector<8x384xf32> to vector<8x128xf32>
      %211 = arith.addf %210, %9 : vector<8x128xf32>
      %212 = arith.mulf %200, %211 : vector<8x128xf32>
      %213 = arith.addf %209, %212 : vector<8x128xf32>
      %214 = math.tanh %213 : vector<8x128xf32>
      %cst_67 = arith.constant 1.000000e+00 : f32
      %215 = vector.broadcast %cst_67 : f32 to vector<8x128xf32>
      %216 = arith.subf %215, %208 : vector<8x128xf32>
      %217 = arith.mulf %216, %214 : vector<8x128xf32>
      %218 = arith.mulf %208, %186 : vector<8x128xf32>
      %219 = arith.addf %217, %218 : vector<8x128xf32>
      %c6_i32 = arith.constant 6 : i32
      %c8_i32_68 = arith.constant 8 : i32
      %220 = arith.muli %c6_i32, %c8_i32_68 : i32
      %221 = tpu.assume_multiple %220, 8 : i32
      %222 = arith.index_cast %221 : i32 to index
      %c0_69 = arith.constant 0 : index
      %223 = vector.load %arg11[%222, %c0_69] : memref<64x384xf32, #tpu.memory_space<vmem>>, vector<8x384xf32>
      %c0_70 = arith.constant 0 : index
      %c0_71 = arith.constant 0 : index
      %224 = vector.load %arg4[%c0_70, %c0_71] : memref<128x384xf32, #tpu.memory_space<vmem>>, vector<128x384xf32>
      %cst_72 = arith.constant dense<0.000000e+00> : vector<8x384xf32>
      %225 = tpu.matmul %219, %224, %cst_72 {dimension_numbers = #tpu.dot_dimension_numbers<[1], [0], [0], [1], [0, 0, 1, 1], [], []>} : vector<8x128xf32>, vector<128x384xf32>, vector<8x384xf32> -> vector<8x384xf32>
      %226 = vector.extract_strided_slice %223 {offsets = [0, 0], sizes = [8, 128], strides = [1, 1]} : vector<8x384xf32> to vector<8x128xf32>
      %227 = vector.extract_strided_slice %225 {offsets = [0, 0], sizes = [8, 128], strides = [1, 1]} : vector<8x384xf32> to vector<8x128xf32>
      %228 = arith.addf %226, %227 : vector<8x128xf32>
      %229 = arith.negf %228 : vector<8x128xf32>
      %230 = math.exp %229 : vector<8x128xf32>
      %cst_73 = arith.constant 1.000000e+00 : f32
      %231 = vector.broadcast %cst_73 : f32 to vector<8x128xf32>
      %232 = arith.addf %231, %230 : vector<8x128xf32>
      %233 = arith.divf %231, %232 : vector<8x128xf32>
      %234 = vector.extract_strided_slice %223 {offsets = [0, 128], sizes = [8, 128], strides = [1, 1]} : vector<8x384xf32> to vector<8x128xf32>
      %235 = vector.extract_strided_slice %225 {offsets = [0, 128], sizes = [8, 128], strides = [1, 1]} : vector<8x384xf32> to vector<8x128xf32>
      %236 = arith.addf %234, %235 : vector<8x128xf32>
      %237 = arith.negf %236 : vector<8x128xf32>
      %238 = math.exp %237 : vector<8x128xf32>
      %cst_74 = arith.constant 1.000000e+00 : f32
      %239 = vector.broadcast %cst_74 : f32 to vector<8x128xf32>
      %240 = arith.addf %239, %238 : vector<8x128xf32>
      %241 = arith.divf %239, %240 : vector<8x128xf32>
      %242 = vector.extract_strided_slice %223 {offsets = [0, 256], sizes = [8, 128], strides = [1, 1]} : vector<8x384xf32> to vector<8x128xf32>
      %243 = vector.extract_strided_slice %225 {offsets = [0, 256], sizes = [8, 128], strides = [1, 1]} : vector<8x384xf32> to vector<8x128xf32>
      %244 = arith.addf %243, %9 : vector<8x128xf32>
      %245 = arith.mulf %233, %244 : vector<8x128xf32>
      %246 = arith.addf %242, %245 : vector<8x128xf32>
      %247 = math.tanh %246 : vector<8x128xf32>
      %cst_75 = arith.constant 1.000000e+00 : f32
      %248 = vector.broadcast %cst_75 : f32 to vector<8x128xf32>
      %249 = arith.subf %248, %241 : vector<8x128xf32>
      %250 = arith.mulf %249, %247 : vector<8x128xf32>
      %251 = arith.mulf %241, %219 : vector<8x128xf32>
      %252 = arith.addf %250, %251 : vector<8x128xf32>
      %c7_i32 = arith.constant 7 : i32
      %c8_i32_76 = arith.constant 8 : i32
      %253 = arith.muli %c7_i32, %c8_i32_76 : i32
      %254 = tpu.assume_multiple %253, 8 : i32
      %255 = arith.index_cast %254 : i32 to index
      %c0_77 = arith.constant 0 : index
      %256 = vector.load %arg11[%255, %c0_77] : memref<64x384xf32, #tpu.memory_space<vmem>>, vector<8x384xf32>
      %c0_78 = arith.constant 0 : index
      %c0_79 = arith.constant 0 : index
      %257 = vector.load %arg4[%c0_78, %c0_79] : memref<128x384xf32, #tpu.memory_space<vmem>>, vector<128x384xf32>
      %cst_80 = arith.constant dense<0.000000e+00> : vector<8x384xf32>
      %258 = tpu.matmul %252, %257, %cst_80 {dimension_numbers = #tpu.dot_dimension_numbers<[1], [0], [0], [1], [0, 0, 1, 1], [], []>} : vector<8x128xf32>, vector<128x384xf32>, vector<8x384xf32> -> vector<8x384xf32>
      %259 = vector.extract_strided_slice %256 {offsets = [0, 0], sizes = [8, 128], strides = [1, 1]} : vector<8x384xf32> to vector<8x128xf32>
      %260 = vector.extract_strided_slice %258 {offsets = [0, 0], sizes = [8, 128], strides = [1, 1]} : vector<8x384xf32> to vector<8x128xf32>
      %261 = arith.addf %259, %260 : vector<8x128xf32>
      %262 = arith.negf %261 : vector<8x128xf32>
      %263 = math.exp %262 : vector<8x128xf32>
      %cst_81 = arith.constant 1.000000e+00 : f32
      %264 = vector.broadcast %cst_81 : f32 to vector<8x128xf32>
      %265 = arith.addf %264, %263 : vector<8x128xf32>
      %266 = arith.divf %264, %265 : vector<8x128xf32>
      %267 = vector.extract_strided_slice %256 {offsets = [0, 128], sizes = [8, 128], strides = [1, 1]} : vector<8x384xf32> to vector<8x128xf32>
      %268 = vector.extract_strided_slice %258 {offsets = [0, 128], sizes = [8, 128], strides = [1, 1]} : vector<8x384xf32> to vector<8x128xf32>
      %269 = arith.addf %267, %268 : vector<8x128xf32>
      %270 = arith.negf %269 : vector<8x128xf32>
      %271 = math.exp %270 : vector<8x128xf32>
      %cst_82 = arith.constant 1.000000e+00 : f32
      %272 = vector.broadcast %cst_82 : f32 to vector<8x128xf32>
      %273 = arith.addf %272, %271 : vector<8x128xf32>
      %274 = arith.divf %272, %273 : vector<8x128xf32>
      %275 = vector.extract_strided_slice %256 {offsets = [0, 256], sizes = [8, 128], strides = [1, 1]} : vector<8x384xf32> to vector<8x128xf32>
      %276 = vector.extract_strided_slice %258 {offsets = [0, 256], sizes = [8, 128], strides = [1, 1]} : vector<8x384xf32> to vector<8x128xf32>
      %277 = arith.addf %276, %9 : vector<8x128xf32>
      %278 = arith.mulf %266, %277 : vector<8x128xf32>
      %279 = arith.addf %275, %278 : vector<8x128xf32>
      %280 = math.tanh %279 : vector<8x128xf32>
      %cst_83 = arith.constant 1.000000e+00 : f32
      %281 = vector.broadcast %cst_83 : f32 to vector<8x128xf32>
      %282 = arith.subf %281, %274 : vector<8x128xf32>
      %283 = arith.mulf %282, %280 : vector<8x128xf32>
      %284 = arith.mulf %274, %252 : vector<8x128xf32>
      %285 = arith.addf %283, %284 : vector<8x128xf32>
      %c7_i32_84 = arith.constant 7 : i32
      %c0_85 = arith.constant 0 : index
      %c0_86 = arith.constant 0 : index
      %286 = vector.load %arg12[%c0_85, %c0_86] : memref<8x128xf32, #tpu.memory_space<vmem>>, vector<8x128xf32>
      tpu.vector_store %arg12[%c0_85, %c0_86], %285 {strides = array<i32>} : memref<8x128xf32, #tpu.memory_space<vmem>>, vector<8x128xf32>,
    } else {
    }
    %c0_i32_10 = arith.constant 0 : i32
    %13 = arith.cmpi eq, %arg0, %c0_i32_10 : i32
    %14 = arith.extui %13 : i1 to i32
    %c0_i32_11 = arith.constant 0 : i32
    %15 = arith.cmpi ne, %14, %c0_i32_11 : i32
    scf.if %15 {
      %c0_12 = arith.constant 0 : index
      %c0_13 = arith.constant 0 : index
      %16 = vector.load %arg12[%c0_12, %c0_13] : memref<8x128xf32, #tpu.memory_space<vmem>>, vector<8x128xf32>
      %c0_14 = arith.constant 0 : index
      %c0_15 = arith.constant 0 : index
      %17 = vector.load %arg10[%c0_14, %c0_15] : memref<8x128xf32, #tpu.memory_space<vmem>>, vector<8x128xf32>
      tpu.vector_store %arg10[%c0_14, %c0_15], %16 {strides = array<i32>} : memref<8x128xf32, #tpu.memory_space<vmem>>, vector<8x128xf32>,
    } else {
    }
    return
  }
  func.func @transform_0(%arg0: i32) -> (i32, i32) {
    %c0_i32 = arith.constant 0 : i32
    %c0_i32_0 = arith.constant 0 : i32
    return %arg0, %c0_i32 : i32, i32
  }
  func.func @transform_1(%arg0: i32) -> (i32, i32) {
    %c0_i32 = arith.constant 0 : i32
    %c0_i32_0 = arith.constant 0 : i32
    %c0_i32_1 = arith.constant 0 : i32
    return %c0_i32, %c0_i32_0 : i32, i32
  }
  func.func @transform_2(%arg0: i32) -> (i32, i32) {
    %c0_i32 = arith.constant 0 : i32
    %c0_i32_0 = arith.constant 0 : i32
    %c0_i32_1 = arith.constant 0 : i32
    return %c0_i32, %c0_i32_0 : i32, i32
  }
  func.func @transform_3(%arg0: i32) -> (i32, i32) {
    %c0_i32 = arith.constant 0 : i32
    %c0_i32_0 = arith.constant 0 : i32
    %c0_i32_1 = arith.constant 0 : i32
    return %c0_i32, %c0_i32_0 : i32, i32
  }
  func.func @transform_4(%arg0: i32) -> (i32, i32) {
    %c0_i32 = arith.constant 0 : i32
    %c0_i32_0 = arith.constant 0 : i32
    %c0_i32_1 = arith.constant 0 : i32
    return %c0_i32, %c0_i32_0 : i32, i32
  }
  func.func @transform_5(%arg0: i32) -> (i32, i32) {
    %c0_i32 = arith.constant 0 : i32
    %c0_i32_0 = arith.constant 0 : i32
    %c0_i32_1 = arith.constant 0 : i32
    return %c0_i32, %c0_i32_0 : i32, i32
  }
  func.func @transform_6(%arg0: i32) -> (i32, i32) {
    %c0_i32 = arith.constant 0 : i32
    %c0_i32_0 = arith.constant 0 : i32
    %c0_i32_1 = arith.constant 0 : i32
    return %c0_i32, %c0_i32_0 : i32, i32
  }
  func.func @transform_7(%arg0: i32) -> (i32, i32) {
    %c0_i32 = arith.constant 0 : i32
    %c0_i32_0 = arith.constant 0 : i32
    %c0_i32_1 = arith.constant 0 : i32
    return %c0_i32, %c0_i32_0 : i32, i32
  }
  func.func @transform_8(%arg0: i32) -> (i32, i32) {
    %c0_i32 = arith.constant 0 : i32
    %c0_i32_0 = arith.constant 0 : i32
    %c0_i32_1 = arith.constant 0 : i32
    return %c0_i32, %c0_i32_0 : i32, i32
  }
  func.func @transform_9(%arg0: i32) -> (i32, i32) {
    %c0_i32 = arith.constant 0 : i32
    %c0_i32_0 = arith.constant 0 : i32
    %c0_i32_1 = arith.constant 0 : i32
    return %c0_i32, %c0_i32_0 : i32, i32
  }
}

</mosaic_0001>

<bundles_post_ra>
// kernel: tpu_custom_call.1
= control target key start
LH: loop header
LB: loop body
LE: loop exit
PB: predicated region body
PF: predicated region fallthrough
CT: control target
= control target key end

     0   :  { %15 = vsyncpa [#allocation5], 0  ;;  %s3734_s0 = inlined_call_operand.vmem [shape: f32[64,16], index: 0, kind: input, shape index: {}]   ;;  %s3735_s1 = inlined_call_operand.vmem [shape: f32[8,128], index: 1, kind: input, shape index: {}]   ;;  %s3736_s2 = inlined_call_operand.vmem [shape: f32[16,384], index: 2, kind: input, shape index: {}]   ;;  %s3737_s3 = inlined_call_operand.hbm [shape: f32[128,384], index: 3, kind: input, shape index: {}]   ;;  %s3738_s4 = inlined_call_operand.vmem [shape: f32[1,384], index: 4, kind: input, shape index: {}]   ;;  %s3739_s5 = inlined_call_operand.vmem [shape: f32[1,128], index: 5, kind: input, shape index: {}]   ;;  %s3740_s6 = inlined_call_operand.hbm [shape: f32[128,128], index: 6, kind: input, shape index: {}]   ;;  %s3741_s7 = inlined_call_operand.vmem [shape: f32[1,128], index: 7, kind: input, shape index: {}]   ;;  %s3742_s8 = inlined_call_operand.hbm [shape: f32[8,128], index: 8, kind: output, shape index: {0}]   ;;  %s3743_s9 = inlined_call_operand.hbm [shape: f32[8,128], index: 9, kind: output, shape index: {1}]  }
   0x1   :  { %16 = vsyncpa [#allocation8], 0 }
   0x2   :  { %17 = vsyncpa [#allocation6], 0 }
   0x3   :  { %18 = vsyncpa [#allocation11], 0  ;;  %s2708_s30 = smov [#allocation4]  }
   0x4   :  { %s30_s10 = sshll.u32 %s2708_s30, 4  ;;  %s31_s10 = int_to_ptr.vmem [resolvable:$true] %s30_s10 }
   0x5   :  { %s2628_s11 = scalar_lea.vmem %s31_s10, 6144  ;;  %p2633_p1 = scmp.lt.s32.totalorder %s31_s10, %s31_s10 }
   0x6   :  { %p2629_p0 = scmp.ne.s32.totalorder %s31_s10, %s2628_s11  ;;  %p2634_p2 = scmp.lt.s32.totalorder %s2628_s11, %s2628_s11 }
   0x8   :  { %p2635_p3 = por %p2634_p2, %p2633_p1 }
   0xa   :  { %p2636_p4 = pnand %p2635_p3, %p2629_p0 }
   0xc   :  { %2639 = shalt.err (!%p2636_p4)
}
   0xd   :  { %s2709_s12 = smov 384   ;;  %s2710_s13 = smov 24  }
   0xe   :  { %36 = dma.hbm_to_vmem [thread:$0]  %s3737_s3, 6144, %s31_s10, [#allocation5], %s2709_s12, %s2709_s12, %s2710_s13  }
   0xf   :  { %s2711_s16 = smov [#allocation7]  }
  0x10   :  { %s46_s17 = sshll.u32 %s2711_s16, 4  ;;  %s47_s17 = int_to_ptr.vmem [resolvable:$true] %s46_s17 }
  0x11   :  { %s2648_s18 = scalar_lea.vmem %s47_s17, 2048  ;;  %p2653_p6 = scmp.lt.s32.totalorder %s47_s17, %s47_s17 }
  0x12   :  { %p2649_p5 = scmp.ne.s32.totalorder %s47_s17, %s2648_s18  ;;  %p2654_p7 = scmp.lt.s32.totalorder %s2648_s18, %s2648_s18 }
  0x14   :  { %p2655_p8 = por %p2654_p7, %p2653_p6 }
  0x16   :  { %p2656_p9 = pnand %p2655_p8, %p2649_p5 }
  0x18   :  { %2659 = shalt.err (!%p2656_p9)
}
  0x19   :  { %s2712_s19 = smov 128   ;;  %s2713_s20 = smov 8  }
  0x1a   :  { %52 = dma.hbm_to_vmem [thread:$0]  %s3740_s6, 2048, %s47_s17, [#allocation8], %s2712_s19, %s2712_s19, %s2713_s20  }
  0x1b   :  { %2700 = dma.done.wait [#allocation5], 6144  }
  0x1c   :  { %2701 = vsyncadd [#allocation5], 4294961152 }
  0x1d   :  { %2702 = dma.done.wait [#allocation8], 2048  }
  0x1e   :  { %2703 = vsyncadd [#allocation8], 4294965248  ;;  %v3744_v0 = vmov 0.0   ;;  %v73_v1 = vld [vmem:[%s3736_s2 + $0x20] sm:$0xff]  ;;  %v72_v2 = vld [vmem:[%s3736_s2 + $0x18] sm:$0xff]  ;;  %vm92_vm0 = vcmask 130048  }
  0x1f   :  { %181 = vmatprep.mubr.f32.mxu0 %v3744_v0  ;;  %v70_v3 = vld [vmem:[%s3736_s2 + $0x8] sm:$0xff]  ;;  %145 = vmatprep.subr.mxu0 %v73_v1  ;;  %v69_v4 = vld [vmem:[%s3736_s2] sm:$0xff]  ;;  %v2790_v6 = vld [vmem:[#allocation4 + $0x170] sm:$0xff]  ;;  %vm2715_vm1 = vmmov 0  }
  0x20   :  { %v61_v5 = vld [vmem:[%s3734_s0] sm:$0xff]  ;;  %146 = vmatpush1.msra.mxu0 %v72_v2  ;;  %3769 = vst [vmem:[#allocation16_spill] sm:$0xff] %v2790_v6  ;;  %v2793_v7 = vld [vmem:[#allocation4 + $0x168] sm:$0xff]  ;;  %v2795_v8 = vld [vmem:[#allocation4 + $0x158] sm:$0xff] }
  0x21   :  { %2154 = vmatprep.mubr.msk.f32.mxu1 %vm92_vm0, %v61_v5  ;;  %147 = vmatprep.subr.mxu0 %v70_v3  ;;  %v2799_v9 = vld [vmem:[#allocation4 + $0x150] sm:$0xff]  ;;  %v62_v10 = vld [vmem:[%s3734_s0 + $0x8] sm:$0xff]  ;;  %v2806_v11 = vld [vmem:[#allocation4 + $0x140] sm:$0xff] }
  0x22   :  { %148 = vmatpush1.msra.mxu0 %v69_v4  ;;  %v2809_v12 = vld [vmem:[#allocation4 + $0x138] sm:$0xff]  ;;  %v2812_v13 = vld [vmem:[#allocation4 + $0x128] sm:$0xff]  ;;  %v2816_v14 = vld [vmem:[#allocation4 + $0x120] sm:$0xff] }
  0x23   :  { %1953 = vmatmul.mubr.msk.f32.vlgmr.msra.gmra.mxu0 %vm92_vm0, %v61_v5  ;;  %425 = vmatprep.subr.mxu0 %v2790_v6  ;;  %v2823_v15 = vld [vmem:[%s3734_s0 + $0x10] sm:$0xff]  ;;  %v2828_v17 = vld [vmem:[#allocation4 + $0x108] sm:$0xff]  ;;  %v2831_v18 = vld [vmem:[#allocation4 + $0xf8] sm:$0xff] }
  0x24   :  { %426 = vmatpush1.msra.mxu0 %v2793_v7  ;;  %187 = vmatprep.mubr.f32.mxu0 %v3744_v0  ;;  %v2825_v16 = vld [vmem:[#allocation4 + $0x110] sm:$0xff]  ;;  %v74_v19 = vld [vmem:[%s3736_s2 + $0x28] sm:$0xff]  ;;  %v2846_v21 = vld [vmem:[%s3734_s0 + $0x18] sm:$0xff] }
  0x25   :  { %427 = vmatprep.subr.mxu0 %v2795_v8  ;;  %v2839_v20 = vld [vmem:[#allocation4 + $0xf0] sm:$0xff]  ;;  %v2848_v22 = vld [vmem:[#allocation4 + $0xe0] sm:$0xff]  ;;  %v2851_v23 = vld [vmem:[#allocation4 + $0xd8] sm:$0xff]  ;;  %2150 = vmatprep.subr.mxu1 %v74_v19 }
  0x26   :  { %428 = vmatpush1.msra.mxu0 %v2799_v9  ;;  %v2854_v24 = vld [vmem:[#allocation4 + $0xc8] sm:$0xff]  ;;  %2151 = vmatpush3.msra.mxu1 %v74_v19  ;;  %v71_v25 = vld [vmem:[%s3736_s2 + $0x10] sm:$0xff]  ;;  %v2862_v26 = vld [vmem:[#allocation4 + $0xc0] sm:$0xff] }
  0x27   :  { %1954 = vmatmul.mubr.msk.f32.gmra.mxu0 %vm92_vm0, %v62_v10  ;;  %429 = vmatprep.subr.mxu0 %v2806_v11  ;;  %v2869_v27 = vld [vmem:[%s3734_s0 + $0x20] sm:$0xff]  ;;  %v2871_v28 = vld [vmem:[#allocation4 + $0xb0] sm:$0xff]  ;;  %v2874_v29 = vld [vmem:[#allocation4 + $0xa8] sm:$0xff] }
  0x28   :  { %430 = vmatpush1.msra.mxu0 %v2809_v12  ;;  %193 = vmatprep.mubr.f32.mxu0 %v3744_v0  ;;  %v2877_v30 = vld [vmem:[#allocation4 + $0x98] sm:$0xff]  ;;  %v2882_v31 = vld [vmem:[#allocation4 + $0x90] sm:$0xff]  ;;  %v2889_v32 = vld [vmem:[%s3734_s0 + $0x28] sm:$0xff] }
  0x29   :  { %431 = vmatprep.subr.mxu0 %v2812_v13  ;;  %2152 = vmatprep.subr.mxu1 %v71_v25  ;;  %v2891_v33 = vld [vmem:[#allocation4 + $0x80] sm:$0xff]  ;;  %v2894_v34 = vld [vmem:[#allocation4 + $0x78] sm:$0xff]  ;;  %v2898_v35 = vld [vmem:[#allocation4 + $0x68] sm:$0xff] }
  0x2a   :  { %432 = vmatpush1.msra.mxu0 %v2816_v14  ;;  %2153 = vmatpush3.msra.mxu1 %v71_v25  ;;  %v2901_v36 = vld [vmem:[#allocation4 + $0x178] sm:$0xff]  ;;  %v2906_v37 = vld [vmem:[#allocation4 + $0x60] sm:$0xff]  ;;  %v67_v38 = vld [vmem:[%s3734_s0 + $0x30] sm:$0xff] }
  0x2b   :  { %1955 = vmatmul.mubr.msk.f32.gmra.mxu0 %vm92_vm0, %v2823_v15  ;;  %433 = vmatprep.subr.mxu0 %v2825_v16  ;;  %v2913_v39 = vld [vmem:[#allocation4 + $0x50] sm:$0xff]  ;;  %v2916_v40 = vld [vmem:[#allocation4 + $0x48] sm:$0xff]  ;;  %v2920_v41 = vld [vmem:[#allocation4 + $0x38] sm:$0xff] }
  0x2c   :  { %434 = vmatpush1.msra.mxu0 %v2828_v17  ;;  %199 = vmatprep.mubr.f32.mxu0 %v3744_v0  ;;  %v2923_v42 = vld [vmem:[#allocation4 + $0x160] sm:$0xff]  ;;  %v2927_v43 = vld [vmem:[#allocation4 + $0x30] sm:$0xff]  ;;  %v68_v44 = vld [vmem:[%s3734_s0 + $0x38] sm:$0xff] }
  0x2d   :  { %435 = vmatprep.subr.mxu0 %v2831_v18  ;;  %2166 = vmatprep.subr.mxu1 %v3744_v0  ;;  %v2934_v45 = vld [vmem:[#allocation4 + $0x20] sm:$0xff]  ;;  %v2937_v46 = vld [vmem:[#allocation4 + $0x18] sm:$0xff]  ;;  %v2941_v47 = vld [vmem:[#allocation4 + $0x8] sm:$0xff] }
  0x2e   :  { %436 = vmatpush1.msra.mxu0 %v2839_v20  ;;  %2155 = vmatmul.mubr.msk.f32.vlgmr.msra.gmra.mxu1 %vm92_vm0, %v62_v10  ;;  %3770 = vst [vmem:[#allocation17_spill] sm:$0xff] %v2934_v45  ;;  %3771 = vst [vmem:[#allocation18_spill] sm:$0xff] %v2937_v46  ;;  %v2944_v48 = vld [vmem:[#allocation4 + $0x148] sm:$0xff]  ;;  %v2948_v49 = vld [vmem:[#allocation4] sm:$0xff] }
  0x2f   :  { %1956 = vmatmul.mubr.msk.f32.gmra.mxu0 %vm92_vm0, %v2846_v21  ;;  %437 = vmatprep.subr.mxu0 %v2848_v22  ;;  %3772 = vst [vmem:[#allocation19_spill] sm:$0xff] %v2941_v47  ;;  %3773 = vst [vmem:[#allocation20_spill] sm:$0xff] %v2948_v49  ;;  %v2955_v50 = vld [vmem:[%s3735_s1] sm:$0xff]  ;;  %v2957_v51 = vld [vmem:[#allocation4 + $0x130] sm:$0xff] }
  0x30   :  { %438 = vmatpush1.msra.mxu0 %v2851_v23  ;;  %205 = vmatprep.mubr.f32.mxu0 %v3744_v0  ;;  %v2963_v52 = vld [vmem:[#allocation4 + $0x118] sm:$0xff]  ;;  %v2968_v53 = vld [vmem:[#allocation4 + $0x100] sm:$0xff]  ;;  %v2975_v54 = vld [vmem:[#allocation4 + $0xe8] sm:$0xff] }
  0x31   :  { %439 = vmatprep.subr.mxu0 %v2854_v24  ;;  %2167 = vmatpush3.msra.mxu1 %v2901_v36  ;;  %v2983_v55 = vld [vmem:[#allocation4 + $0xd0] sm:$0xff]  ;;  %v2989_v56 = vld [vmem:[#allocation4 + $0xb8] sm:$0xff]  ;;  %v2996_v57 = vld [vmem:[#allocation4 + $0xa0] sm:$0xff] }
  0x32   :  { %440 = vmatpush1.msra.mxu0 %v2862_v26  ;;  %2168 = vmatprep.subr.mxu1 %v3744_v0  ;;  %v3000_v58 = vld [vmem:[#allocation4 + $0x88] sm:$0xff]  ;;  %v3007_v59 = vld [vmem:[#allocation4 + $0x70] sm:$0xff]  ;;  %v3011_v60 = vld [vmem:[#allocation4 + $0x58] sm:$0xff] }
  0x33   :  { %1957 = vmatmul.mubr.msk.f32.gmra.mxu0 %vm92_vm0, %v2869_v27  ;;  %441 = vmatprep.subr.mxu0 %v2871_v28  ;;  %v3015_v61 = vld [vmem:[#allocation4 + $0x40] sm:$0xff]  ;;  %v3019_v62 = vld [vmem:[#allocation4 + $0x28] sm:$0xff]  ;;  %v3023_v63 = vld [vmem:[#allocation4 + $0x10] sm:$0xff] }
  0x34   :  { %442 = vmatpush1.msra.mxu0 %v2874_v29  ;;  %211 = vmatprep.mubr.f32.mxu0 %v3744_v0  ;;  %3774 = vst [vmem:[#allocation21_spill] sm:$0xff] %v3019_v62  ;;  %3775 = vst [vmem:[#allocation22_spill] sm:$0xff] %v3023_v63  ;;  %v603_v1 = vld [vmem:[#allocation7 + $0x78] sm:$0xff]  ;;  %v602_v2 = vld [vmem:[#allocation7 + $0x70] sm:$0xff] }
  0x35   :  { %443 = vmatprep.subr.mxu0 %v2877_v30  ;;  %2169 = vmatpush3.msra.mxu1 %v2923_v42  ;;  %v601_v3 = vld [vmem:[#allocation7 + $0x68] sm:$0xff]  ;;  %v600_v4 = vld [vmem:[#allocation7 + $0x60] sm:$0xff]  ;;  %v599_v5 = vld [vmem:[#allocation7 + $0x58] sm:$0xff] }
  0x36   :  { %444 = vmatpush1.msra.mxu0 %v2882_v31  ;;  %2170 = vmatprep.subr.mxu1 %v3744_v0  ;;  %v598_v10 = vld [vmem:[#allocation7 + $0x50] sm:$0xff]  ;;  %v596_v19 = vld [vmem:[#allocation7 + $0x40] sm:$0xff] }
  0x37   :  { %1958 = vmatmul.mubr.msk.f32.gmra.mxu0 %vm92_vm0, %v2889_v32  ;;  %445 = vmatprep.subr.mxu0 %v2891_v33  ;;  %v594_v25 = vld [vmem:[#allocation7 + $0x30] sm:$0xff] }
  0x38   :  { %446 = vmatpush1.msra.mxu0 %v2894_v34  ;;  %217 = vmatprep.mubr.f32.mxu0 %v3744_v0 }
  0x39   :  { %447 = vmatprep.subr.mxu0 %v2898_v35  ;;  %2171 = vmatpush3.msra.mxu1 %v2944_v48 }
  0x3a   :  { %448 = vmatpush1.msra.mxu0 %v2906_v37  ;;  %2172 = vmatprep.subr.mxu1 %v3744_v0 }
  0x3b   :  { %1959 = vmatmul.mubr.msk.f32.gmra.mxu0 %vm92_vm0, %v67_v38  ;;  %449 = vmatprep.subr.mxu0 %v2913_v39 }
  0x3c   :  { %450 = vmatpush1.msra.mxu0 %v2916_v40  ;;  %223 = vmatprep.mubr.f32.mxu0 %v3744_v0 }
  0x3d   :  { %451 = vmatprep.subr.mxu0 %v2920_v41  ;;  %2173 = vmatpush3.msra.mxu1 %v2957_v51 }
  0x3e   :  { %452 = vmatpush1.msra.mxu0 %v2927_v43  ;;  %2174 = vmatprep.subr.mxu1 %v3744_v0 }
  0x3f   :  { %1960 = vmatmul.mubr.msk.f32.gmra.mxu0 %vm92_vm0, %v68_v44  ;;  %453 = vmatprep.subr.mxu0 %v2934_v45 }
  0x40   :  { %454 = vmatpush1.msra.mxu0 %v2937_v46  ;;  %489 = vmatprep.mubr.f32.mxu0 %v3744_v0 }
  0x41   :  { %455 = vmatprep.subr.mxu0 %v2941_v47  ;;  %2157 = vmatprep.mubr.msk.f32.mxu1 %vm92_vm0, %v2823_v15  ;;  %v597_v15 = vld [vmem:[#allocation7 + $0x48] sm:$0xff] }
  0x42   :  { %456 = vmatpush1.msra.mxu0 %v2948_v49  ;;  %2175 = vmatpush3.msra.mxu1 %v2963_v52 }
  0x43   :  { %490 = vmatmul.mubr.f32.vlgmr.msra.gmra.mxu0 %v2955_v50  ;;  %2201 = vmatprep.subr.mxu0 %v3744_v0 }
  0x44   :  { %2176 = vmatprep.subr.mxu1 %v3744_v0  ;;  %2158 = vmatmul.mubr.msk.f32.gmra.mxu1 %vm92_vm0, %v2846_v21  ;;  %v595_v21 = vld [vmem:[#allocation7 + $0x38] sm:$0xff] }
  0x45   :  { %2177 = vmatpush3.msra.mxu1 %v2968_v53  ;;  %2160 = vmatprep.mubr.msk.f32.mxu1 %vm92_vm0, %v2869_v27  ;;  %v593_v27 = vld [vmem:[#allocation7 + $0x28] sm:$0xff] }
  0x46   :  { %2178 = vmatprep.subr.mxu1 %v3744_v0  ;;  %2233 = vmatprep.mubr.msk.f32.mxu0 %vm2715_vm1, %v3744_v0 }
  0x47   :  { %2179 = vmatpush3.msra.mxu1 %v2975_v54  ;;  %2202 = vmatpush3.msra.mxu0 %v603_v1  ;;  %v589_v1 = vld [vmem:[#allocation7 + $0x8] sm:$0xff] }
  0x48   :  { %2180 = vmatprep.subr.mxu1 %v3744_v0  ;;  %2161 = vmatmul.mubr.msk.f32.gmra.mxu1 %vm92_vm0, %v2889_v32  ;;  %v592_v32 = vld [vmem:[#allocation7 + $0x20] sm:$0xff] }
  0x49   :  { %2181 = vmatpush3.msra.mxu1 %v2983_v55  ;;  %2163 = vmatprep.mubr.msk.f32.mxu1 %vm92_vm0, %v67_v38  ;;  %v591_v38 = vld [vmem:[#allocation7 + $0x18] sm:$0xff] }
  0x4a   :  { %2182 = vmatprep.subr.mxu1 %v3744_v0  ;;  %2203 = vmatprep.subr.mxu0 %v3744_v0 }
  0x4b   :  { %2183 = vmatpush3.msra.mxu1 %v2989_v56  ;;  %2204 = vmatpush3.msra.mxu0 %v602_v2  ;;  %v588_v2 = vld [vmem:[#allocation7] sm:$0xff] }
  0x4c   :  { %2184 = vmatprep.subr.mxu1 %v3744_v0  ;;  %2164 = vmatmul.mubr.msk.f32.gmra.mxu1 %vm92_vm0, %v68_v44  ;;  %v590_v44 = vld [vmem:[#allocation7 + $0x10] sm:$0xff] }
  0x4d   :  { %2185 = vmatpush3.msra.mxu1 %v2996_v57  ;;  %2198 = vmatprep.mubr.msk.f32.mxu1 %vm2715_vm1, %v3744_v0 }
  0x4e   :  { %2186 = vmatprep.subr.mxu1 %v3744_v0  ;;  %2205 = vmatprep.subr.mxu0 %v3744_v0 }
  0x4f   :  { %2187 = vmatpush3.msra.mxu1 %v3000_v58  ;;  %2206 = vmatpush3.msra.mxu0 %v601_v3  ;;  %v77_v3 = vlaneseq }
  0x50   :  { %2188 = vmatprep.subr.mxu1 %v3744_v0  ;;  %2207 = vmatprep.subr.mxu0 %v3744_v0 }
  0x51   :  { %2189 = vmatpush3.msra.mxu1 %v3007_v59  ;;  %2208 = vmatpush3.msra.mxu0 %v600_v4  ;;  %v78_v4 = vshrl.u32 %v77_v3, 7 }
  0x52   :  { %2190 = vmatprep.subr.mxu1 %v3744_v0  ;;  %2209 = vmatprep.subr.mxu0 %v3744_v0 }
  0x53   :  { %2191 = vmatpush3.msra.mxu1 %v3011_v60  ;;  %2210 = vmatpush3.msra.mxu0 %v599_v5  ;;  %v79_v5 = vsub.s32 0, %v78_v4 }
  0x54   :  { %2192 = vmatprep.subr.mxu1 %v3744_v0  ;;  %2211 = vmatprep.subr.mxu0 %v3744_v0 }
  0x55   :  { %2193 = vmatpush3.msra.mxu1 %v3015_v61  ;;  %2212 = vmatpush3.msra.mxu0 %v598_v10  ;;  %v75_v10 = vld [vmem:[%s3738_s4] sm:$0x7] }
  0x56   :  { %2194 = vmatprep.subr.mxu1 %v3744_v0  ;;  %2213 = vmatprep.subr.mxu0 %v3744_v0 }
  0x57   :  { %2195 = vmatpush3.msra.mxu1 %v3019_v62  ;;  %2214 = vmatpush3.msra.mxu0 %v597_v15 }
  0x58   :  { %2196 = vmatprep.subr.mxu1 %v3744_v0  ;;  %2215 = vmatprep.subr.mxu0 %v3744_v0 }
  0x59   :  { %2197 = vmatpush3.msra.mxu1 %v3023_v63  ;;  %2216 = vmatpush3.msra.mxu0 %v596_v19  ;;  %v83_v19 = vsub.s32 1, %v78_v4 }
  0x5a   :  { %2199 = vmatmul.mubr.f32.vlgmr.msra.gmra.mxu1 %v2955_v50  ;;  %736 = vmatprep.subr.mxu1 %v2790_v6 }
  0x5b   :  { %737 = vmatpush1.msra.mxu1 %v2793_v7  ;;  %800 = vmatprep.mubr.f32.mxu1 %v3744_v0 }
  0x5c   :  { %738 = vmatprep.subr.mxu1 %v2795_v8  ;;  %2217 = vmatprep.subr.mxu0 %v3744_v0 }
  0x5d   :  { %739 = vmatpush1.msra.mxu1 %v2799_v9  ;;  %2218 = vmatpush3.msra.mxu0 %v595_v21 }
  0x5e   :  { %740 = vmatprep.subr.mxu1 %v2806_v11  ;;  %2219 = vmatprep.subr.mxu0 %v3744_v0 }
  0x5f   :  { %741 = vmatpush1.msra.mxu1 %v2809_v12  ;;  %2220 = vmatpush3.msra.mxu0 %v594_v25  ;;  %v80_v25 = vrot.slane %v75_v10, %v79_v5 }
  0x60   :  { %742 = vmatprep.subr.mxu1 %v2812_v13  ;;  %2221 = vmatprep.subr.mxu0 %v3744_v0 }
  0x61   :  { %743 = vmatpush1.msra.mxu1 %v2816_v14  ;;  %2222 = vmatpush3.msra.mxu0 %v593_v27 }
  0x62   :  { %744 = vmatprep.subr.mxu1 %v2825_v16  ;;  %2223 = vmatprep.subr.mxu0 %v3744_v0 }
  0x63   :  { %745 = vmatpush1.msra.mxu1 %v2828_v17  ;;  %2224 = vmatpush3.msra.mxu0 %v592_v32  ;;  %v84_v32 = vrot.slane %v75_v10, %v83_v19 }
  0x64   :  { %746 = vmatprep.subr.mxu1 %v2831_v18  ;;  %2225 = vmatprep.subr.mxu0 %v3744_v0 }
  0x65   :  { %747 = vmatpush1.msra.mxu1 %v2839_v20  ;;  %2226 = vmatpush3.msra.mxu0 %v591_v38 }
  0x66   :  { %748 = vmatprep.subr.mxu1 %v2848_v22  ;;  %2227 = vmatprep.subr.mxu0 %v3744_v0 }
  0x67   :  { %749 = vmatpush1.msra.mxu1 %v2851_v23  ;;  %2228 = vmatpush3.msra.mxu0 %v590_v44 }
  0x68   :  { %750 = vmatprep.subr.mxu1 %v2854_v24  ;;  %2229 = vmatprep.subr.mxu0 %v3744_v0 }
  0x69   :  { %751 = vmatpush1.msra.mxu1 %v2862_v26  ;;  %2230 = vmatpush3.msra.mxu0 %v589_v1 }
  0x6a   :  { %752 = vmatprep.subr.mxu1 %v2871_v28  ;;  %2231 = vmatprep.subr.mxu0 %v3744_v0 }
  0x6b   :  { %753 = vmatpush1.msra.mxu1 %v2874_v29  ;;  %2232 = vmatpush3.msra.mxu0 %v588_v2 }
  0x6c   :  { %754 = vmatprep.subr.mxu1 %v2877_v30  ;;  %2236 = vmatprep.subr.mxu0 %v3744_v0 }
  0x6d   :  { %755 = vmatpush1.msra.mxu1 %v2882_v31 }
  0x6e   :  { %756 = vmatprep.subr.mxu1 %v2891_v33 }
  0x6f   :  { %757 = vmatpush1.msra.mxu1 %v2894_v34 }
  0x70   :  { %758 = vmatprep.subr.mxu1 %v2898_v35 }
  0x71   :  { %759 = vmatpush1.msra.mxu1 %v2906_v37 }
  0x72   :  { %760 = vmatprep.subr.mxu1 %v2913_v39 }
  0x73   :  { %761 = vmatpush1.msra.mxu1 %v2916_v40 }
  0x74   :  { %762 = vmatprep.subr.mxu1 %v2920_v41 }
  0x75   :  { %763 = vmatpush1.msra.mxu1 %v2927_v43 }
  0x76   :  { %764 = vmatprep.subr.mxu1 %v2934_v45 }
  0x77   :  { %765 = vmatpush1.msra.mxu1 %v2937_v46 }
  0x78   :  { %766 = vmatprep.subr.mxu1 %v2941_v47  ;;  %v87_v47 = vsub.s32 2, %v78_v4 }
  0x79   :  { %767 = vmatpush1.msra.mxu1 %v2948_v49 }
  0x7a   :  { %905 = vmatprep.subr.mxu1 %v2790_v6  ;;  %v88_v19 = vrot.slane %v75_v10, %v87_v47 }
  0xe3   :  { %v183_v15 = vpop.f32.mrf.mxu0 }
  0xe5   :  { %v185_v21 = vpop.f32.mrf.mxu0 }
  0xe7   :  { %v189_v27 = vpop.f32.mrf.mxu0 }
  0xe8   :  { %v3082_v38 = vadd.f32 %v189_v27, %v80_v25 }
  0xe9   :  { %v191_v44 = vpop.f32.mrf.mxu0 }
  0xea   :  { %3776 = vst [vmem:[#allocation23_spill] sm:$0xff] %v3082_v38  ;;  %v3084_v1 = vadd.f32 %v191_v44, %v84_v32 }
  0xeb   :  { %v195_v2 = vpop.f32.mrf.mxu0 }
  0xec   :  { %3777 = vst [vmem:[#allocation24_spill] sm:$0xff] %v3084_v1  ;;  %v3086_v0 = vadd.f32 %v195_v2, %v80_v25 }
  0xed   :  { %v197_v3 = vpop.f32.mrf.mxu0 }
  0xee   :  { %3778 = vst [vmem:[#allocation25_spill] sm:$0xff] %v3086_v0  ;;  %v3088_v6 = vadd.f32 %v197_v3, %v84_v32  ;;  %v2156_v1 = vpop.f32.mrf.mxu1 }
  0xef   :  { %v201_v49 = vpop.f32.mrf.mxu0  ;;  %v3098_v0 = vadd.f32 %v2156_v1, %v88_v19 }
  0xf0   :  { %3779 = vst [vmem:[#allocation26_spill] sm:$0xff] %v3088_v6  ;;  %v3090_v63 = vadd.f32 %v201_v49, %v80_v25 }
  0xf1   :  { %v203_v46 = vpop.f32.mrf.mxu0  ;;  %3784 = vst [vmem:[#allocation31_spill] sm:$0xff] %v3098_v0 }
  0xf2   :  { %3780 = vst [vmem:[#allocation27_spill] sm:$0xff] %v3090_v63  ;;  %v3092_v45 = vadd.f32 %v203_v46, %v84_v32 }
  0xf3   :  { %v207_v5 = vpop.f32.mrf.mxu0 }
  0xf4   :  { %3781 = vst [vmem:[#allocation28_spill] sm:$0xff] %v3092_v45  ;;  %v3094_v27 = vadd.f32 %v207_v5, %v80_v25  ;;  %v184_v5 = vadd.f32 %v183_v15, %v80_v25 }
  0xf5   :  { %v209_v38 = vpop.f32.mrf.mxu0 }
  0xf6   :  { %3782 = vst [vmem:[#allocation29_spill] sm:$0xff] %v3094_v27  ;;  %v3096_v44 = vadd.f32 %v209_v38, %v84_v32 }
  0xf7   :  { %v213_v2 = vpop.f32.mrf.mxu0 }
  0xf8   :  { %3783 = vst [vmem:[#allocation30_spill] sm:$0xff] %v3096_v44  ;;  %v3100_v3 = vadd.f32 %v213_v2, %v80_v25  ;;  %v296_v2 = vpop.f32.mrf.mxu1 }
  0xf9   :  { %v215_v6 = vpop.f32.mrf.mxu0 }
  0xfa   :  { %3785 = vst [vmem:[#allocation32_spill] sm:$0xff] %v3100_v3  ;;  %v3102_v4 = vadd.f32 %v215_v6, %v84_v32 }
  0xfb   :  { %v219_v49 = vpop.f32.mrf.mxu0 }
  0xfc   :  { %3786 = vst [vmem:[#allocation33_spill] sm:$0xff] %v3102_v4  ;;  %v3104_v63 = vadd.f32 %v219_v49, %v80_v25  ;;  %v186_v49 = vadd.f32 %v185_v21, %v84_v32 }
  0xfd   :  { %v221_v46 = vpop.f32.mrf.mxu0 }
  0xfe   :  { %3787 = vst [vmem:[#allocation34_spill] sm:$0xff] %v3104_v63  ;;  %v3106_v45 = vadd.f32 %v221_v46, %v84_v32 }
  0xff   :  { %v225_v47 = vpop.f32.mrf.mxu0 }
 0x100   :  { %3788 = vst [vmem:[#allocation35_spill] sm:$0xff] %v3106_v45  ;;  %v3108_v10 = vadd.f32 %v225_v47, %v80_v25 }
 0x101   :  { %v227_v38 = vpop.f32.mrf.mxu0 }
 0x102   :  { %3789 = vst [vmem:[#allocation36_spill] sm:$0xff] %v3108_v10  ;;  %v3110_v44 = vadd.f32 %v227_v38, %v84_v32 }
 0x103   :  { %v491_v1 = vpop.f32.mrf.mxu0 }
 0x104   :  { %3790 = vst [vmem:[#allocation37_spill] sm:$0xff] %v3110_v44  ;;  %v566_v27 = vadd.f32 %v491_v1, %v184_v5  ;;  %v2159_v0 = vpop.f32.mrf.mxu1 }
 0x105   :  { %v493_v6 = vpop.f32.mrf.mxu0  ;;  %v3112_v4 = vadd.f32 %v2159_v0, %v88_v19 }
 0x106   :  { %v1970_v3 = vmul.f32 -1.442695, %v566_v27  ;;  %v306_v63 = vpop.f32.mrf.mxu1  ;;  %v573_v45 = vadd.f32 %v493_v6, %v186_v49  ;;  %v3127_v6 = vld [vmem:[%s3739_s5] ss:$0 sm:$0xff] }
 0x107   :  { %3791 = vst [vmem:[#allocation38_spill] sm:$0xff] %v3112_v4  ;;  %v3114_v46 = vadd.f32 %v306_v63, %v88_v19 }
 0x108   :  { %2491 = vpow2.f32 %v1970_v3  ;;  %v2162_v47 = vpop.f32.mrf.mxu1  ;;  %v1971_v38 = vmul.f32 -1.442695, %v573_v45 }
 0x109   :  { %3792 = vst [vmem:[#allocation39_spill] sm:$0xff] %v3114_v46  ;;  %v3116_v10 = vadd.f32 %v2162_v47, %v88_v19 }
 0x10a   :  { %v316_v15 = vpop.f32.mrf.mxu1  ;;  %2493 = vpow2.f32 %v1971_v38 }
 0x10b   :  { %3793 = vst [vmem:[#allocation40_spill] sm:$0xff] %v3116_v10  ;;  %v3118_v25 = vadd.f32 %v316_v15, %v88_v19  ;;  %v297_v15 = vadd.f32 %v296_v2, %v88_v19  ;;  %v3800_v2 = vld [vmem:[#allocation22_spill] sm:$0xff] }
 0x10c   :  { %v2165_v5 = vpop.f32.mrf.mxu1 }
 0x10d   :  { %3794 = vst [vmem:[#allocation41_spill] sm:$0xff] %v3118_v25  ;;  %v3120_v1 = vadd.f32 %v2165_v5, %v88_v19 }
 0x10e   :  { %v326_v27 = vpop.f32.mrf.mxu1 }
 0x10f   :  { %3795 = vst [vmem:[#allocation42_spill] sm:$0xff] %v3120_v1  ;;  %v3122_v44 = vadd.f32 %v326_v27, %v88_v19  ;;  %v3799_v19 = vld [vmem:[#allocation18_spill] sm:$0xff] }
 0x111   :  { %3796 = vst [vmem:[#allocation43_spill] sm:$0xff] %v3122_v44 }
 0x115   :  { %v2492_v0 = vpop.eup %2491 }
 0x116   :  { %v570_v21 = vadd.f32 1.0, %v2492_v0 }
 0x117   :  { %v2494_v3 = vpop.eup %2493 }
 0x118   :  { %2495 = vrcp.f32 %v570_v21  ;;  %v577_v49 = vadd.f32 1.0, %v2494_v3  ;;  %v3802_v3 = vld [vmem:[#allocation20_spill] sm:$0xff] }
 0x11a   :  { %v562_v63 = vpop.f32.mrf.mxu1  ;;  %2497 = vrcp.f32 %v577_v49  ;;  %v3803_v49 = vld [vmem:[#allocation16_spill] sm:$0xff] }
 0x11b   :  { %v580_v45 = vadd.f32 %v3127_v6, %v562_v63  ;;  %v3797_v63 = vmov 0.0  }
 0x11c   :  { %v2200_v32 = vpop.f32.mrf.mxu1 }
 0x125   :  { %v2496_v47 = vpop.eup %2495 }
 0x126   :  { %v581_v5 = vmul.f32 %v2496_v47, %v580_v45  ;;  %v1972_v45 = vld [vmem:[%s3741_s7] ss:$0 sm:$0xff] }
 0x127   :  { %v2498_v38 = vpop.eup %2497 }
 0x128   :  { %v582_v27 = vadd.f32 %v581_v5, %v297_v15  ;;  %v584_v0 = vsub.f32 1.0, %v2498_v38  ;;  %v586_v32 = vmul.f32 %v2498_v38, %v2955_v50  ;;  %v3798_v50 = vld [vmem:[#allocation17_spill] sm:$0xff] }
 0x12a   :  { %2499 = vtanh.f32 %v582_v27  ;;  %v3804_v27 = vld [vmem:[#allocation23_spill] sm:$0xff] }
 0x137   :  { %v2500_v21 = vpop.eup %2499 }
 0x138   :  { %v585_v1 = vmul.f32 %v2500_v21, %v584_v0 }
 0x13a   :  { %v3131_v44 = vadd.f32 %v586_v32, %v585_v1  ;;  %v3801_v1 = vld [vmem:[#allocation19_spill] sm:$0xff] }
 0x13c   :  { %2234 = vmatmul.mubr.f32.vlgmr.msra.gmra.mxu0 %v3131_v44  ;;  %801 = vmatmul.mubr.f32.vlgmr.msra.gmra.mxu1 %v3131_v44 }
 0x13d   :  { %2237 = vmatpush3.msra.mxu0 %v2901_v36  ;;  %2268 = vmatprep.mubr.msk.f32.mxu0 %vm2715_vm1, %v3797_v63 }
 0x13e   :  { %2238 = vmatprep.subr.mxu0 %v3797_v63  ;;  %906 = vmatpush1.msra.mxu1 %v2793_v7 }
 0x13f   :  { %2239 = vmatpush3.msra.mxu0 %v2923_v42  ;;  %907 = vmatprep.subr.mxu1 %v2795_v8 }
 0x140   :  { %2240 = vmatprep.subr.mxu0 %v3797_v63  ;;  %908 = vmatpush1.msra.mxu1 %v2799_v9 }
 0x141   :  { %2241 = vmatpush3.msra.mxu0 %v2944_v48  ;;  %909 = vmatprep.subr.mxu1 %v2806_v11 }
 0x142   :  { %2242 = vmatprep.subr.mxu0 %v3797_v63  ;;  %910 = vmatpush1.msra.mxu1 %v2809_v12 }
 0x143   :  { %2243 = vmatpush3.msra.mxu0 %v2957_v51  ;;  %911 = vmatprep.subr.mxu1 %v2812_v13 }
 0x144   :  { %2244 = vmatprep.subr.mxu0 %v3797_v63  ;;  %912 = vmatpush1.msra.mxu1 %v2816_v14 }
 0x145   :  { %2245 = vmatpush3.msra.mxu0 %v2963_v52  ;;  %913 = vmatprep.subr.mxu1 %v2825_v16 }
 0x146   :  { %2246 = vmatprep.subr.mxu0 %v3797_v63  ;;  %914 = vmatpush1.msra.mxu1 %v2828_v17 }
 0x147   :  { %2247 = vmatpush3.msra.mxu0 %v2968_v53  ;;  %915 = vmatprep.subr.mxu1 %v2831_v18 }
 0x148   :  { %2248 = vmatprep.subr.mxu0 %v3797_v63  ;;  %916 = vmatpush1.msra.mxu1 %v2839_v20 }
 0x149   :  { %2249 = vmatpush3.msra.mxu0 %v2975_v54  ;;  %917 = vmatprep.subr.mxu1 %v2848_v22 }
 0x14a   :  { %2250 = vmatprep.subr.mxu0 %v3797_v63  ;;  %918 = vmatpush1.msra.mxu1 %v2851_v23 }
 0x14b   :  { %2251 = vmatpush3.msra.mxu0 %v2983_v55  ;;  %919 = vmatprep.subr.mxu1 %v2854_v24 }
 0x14c   :  { %2252 = vmatprep.subr.mxu0 %v3797_v63  ;;  %920 = vmatpush1.msra.mxu1 %v2862_v26 }
 0x14d   :  { %2253 = vmatpush3.msra.mxu0 %v2989_v56  ;;  %921 = vmatprep.subr.mxu1 %v2871_v28 }
 0x14e   :  { %2254 = vmatprep.subr.mxu0 %v3797_v63  ;;  %922 = vmatpush1.msra.mxu1 %v2874_v29 }
 0x14f   :  { %2255 = vmatpush3.msra.mxu0 %v2996_v57  ;;  %923 = vmatprep.subr.mxu1 %v2877_v30 }
 0x150   :  { %2256 = vmatprep.subr.mxu0 %v3797_v63  ;;  %924 = vmatpush1.msra.mxu1 %v2882_v31 }
 0x151   :  { %2257 = vmatpush3.msra.mxu0 %v3000_v58  ;;  %925 = vmatprep.subr.mxu1 %v2891_v33 }
 0x152   :  { %2258 = vmatprep.subr.mxu0 %v3797_v63  ;;  %926 = vmatpush1.msra.mxu1 %v2894_v34 }
 0x153   :  { %2259 = vmatpush3.msra.mxu0 %v3007_v59  ;;  %927 = vmatprep.subr.mxu1 %v2898_v35 }
 0x154   :  { %2260 = vmatprep.subr.mxu0 %v3797_v63  ;;  %928 = vmatpush1.msra.mxu1 %v2906_v37 }
 0x155   :  { %2261 = vmatpush3.msra.mxu0 %v3011_v60  ;;  %929 = vmatprep.subr.mxu1 %v2913_v39 }
 0x156   :  { %2262 = vmatprep.subr.mxu0 %v3797_v63  ;;  %930 = vmatpush1.msra.mxu1 %v2916_v40 }
 0x157   :  { %2263 = vmatpush3.msra.mxu0 %v3015_v61  ;;  %931 = vmatprep.subr.mxu1 %v2920_v41 }
 0x158   :  { %2264 = vmatprep.subr.mxu0 %v3797_v63  ;;  %932 = vmatpush1.msra.mxu1 %v2927_v43 }
 0x159   :  { %2265 = vmatpush3.msra.mxu0 %v3019_v62  ;;  %933 = vmatprep.subr.mxu1 %v3798_v50 }
 0x15a   :  { %2266 = vmatprep.subr.mxu0 %v3797_v63  ;;  %934 = vmatpush1.msra.mxu1 %v3799_v19 }
 0x15b   :  { %2267 = vmatpush3.msra.mxu0 %v3800_v2  ;;  %935 = vmatprep.subr.mxu1 %v3801_v1 }
 0x15c   :  { %2269 = vmatmul.mubr.f32.vlgmr.msra.gmra.mxu0 %v3131_v44  ;;  %2271 = vmatprep.subr.mxu0 %v3797_v63 }
 0x15d   :  { %2272 = vmatpush3.msra.mxu0 %v2901_v36  ;;  %936 = vmatpush1.msra.mxu1 %v3802_v3 }
 0x15e   :  { %2273 = vmatprep.subr.mxu0 %v3797_v63  ;;  %969 = vmatprep.mubr.f32.mxu1 %v3797_v63 }
 0x15f   :  { %2274 = vmatpush3.msra.mxu0 %v2923_v42  ;;  %2303 = vmatprep.mubr.msk.f32.mxu0 %vm2715_vm1, %v3797_v63 }
 0x160   :  { %2275 = vmatprep.subr.mxu0 %v3797_v63  ;;  %1074 = vmatprep.subr.mxu1 %v3803_v49  ;;  %v3805_v49 = vld [vmem:[#allocation24_spill] sm:$0xff] }
 0x161   :  { %2276 = vmatpush3.msra.mxu0 %v2944_v48 }
 0x162   :  { %2277 = vmatprep.subr.mxu0 %v3797_v63 }
 0x163   :  { %2278 = vmatpush3.msra.mxu0 %v2957_v51 }
 0x164   :  { %2279 = vmatprep.subr.mxu0 %v3797_v63 }
 0x165   :  { %2280 = vmatpush3.msra.mxu0 %v2963_v52 }
 0x166   :  { %2281 = vmatprep.subr.mxu0 %v3797_v63 }
 0x167   :  { %2282 = vmatpush3.msra.mxu0 %v2968_v53 }
 0x168   :  { %2283 = vmatprep.subr.mxu0 %v3797_v63 }
 0x169   :  { %2284 = vmatpush3.msra.mxu0 %v2975_v54 }
 0x16a   :  { %2285 = vmatprep.subr.mxu0 %v3797_v63 }
 0x16b   :  { %2286 = vmatpush3.msra.mxu0 %v2983_v55 }
 0x16c   :  { %2287 = vmatprep.subr.mxu0 %v3797_v63 }
 0x16d   :  { %2288 = vmatpush3.msra.mxu0 %v2989_v56 }
 0x16e   :  { %2289 = vmatprep.subr.mxu0 %v3797_v63 }
 0x16f   :  { %2290 = vmatpush3.msra.mxu0 %v2996_v57 }
 0x170   :  { %2291 = vmatprep.subr.mxu0 %v3797_v63 }
 0x171   :  { %2292 = vmatpush3.msra.mxu0 %v3000_v58 }
 0x172   :  { %2293 = vmatprep.subr.mxu0 %v3797_v63 }
 0x173   :  { %2294 = vmatpush3.msra.mxu0 %v3007_v59 }
 0x174   :  { %2295 = vmatprep.subr.mxu0 %v3797_v63 }
 0x175   :  { %2296 = vmatpush3.msra.mxu0 %v3011_v60 }
 0x176   :  { %2297 = vmatprep.subr.mxu0 %v3797_v63 }
 0x177   :  { %2298 = vmatpush3.msra.mxu0 %v3015_v61 }
 0x178   :  { %2299 = vmatprep.subr.mxu0 %v3797_v63 }
 0x179   :  { %2300 = vmatpush3.msra.mxu0 %v3019_v62 }
 0x17a   :  { %2301 = vmatprep.subr.mxu0 %v3797_v63 }
 0x17b   :  { %2302 = vmatpush3.msra.mxu0 %v3800_v2 }
 0x17c   :  { %2306 = vmatprep.subr.mxu0 %v3797_v63 }
 0x1fc   :  { %v677_v47 = vpop.f32.mrf.mxu0  ;;  %v802_v15 = vpop.f32.mrf.mxu1 }
 0x1fd   :  { %v678_v5 = vadd.f32 %v1972_v45, %v677_v47  ;;  %v877_v38 = vadd.f32 %v802_v15, %v3804_v27 }
 0x1fe   :  { %v2235_v0 = vpop.f32.mrf.mxu0  ;;  %v804_v32 = vpop.f32.mrf.mxu1 }
 0x1ff   :  { %681 = vst [vmem:[#allocation9] sm:$0xff] %v678_v5  ;;  %v1973_v21 = vmul.f32 -1.442695, %v877_v38  ;;  %v884_v10 = vadd.f32 %v804_v32, %v3805_v49  ;;  %v3806_v5 = vld [vmem:[#allocation31_spill] sm:$0xff]  ;;  %v3351_v32 = vld [vmem:[#allocation4 + $0x120] sm:$0xff] }
 0x200   :  { %v3359_v49 = vld [vmem:[#allocation4 + $0x108] sm:$0xff] }
 0x201   :  { %2501 = vpow2.f32 %v1973_v21  ;;  %v1974_v25 = vmul.f32 -1.442695, %v884_v10 }
 0x203   :  { %2503 = vpow2.f32 %v1974_v25 }
 0x20e   :  { %v2502_v4 = vpop.eup %2501 }
 0x20f   :  { %v881_v46 = vadd.f32 1.0, %v2502_v4 }
 0x210   :  { %v2504_v2 = vpop.eup %2503 }
 0x211   :  { %2505 = vrcp.f32 %v881_v46  ;;  %v888_v3 = vadd.f32 1.0, %v2504_v2  ;;  %v3335_v2 = vld [vmem:[#allocation4 + $0x150] sm:$0xff] }
 0x213   :  { %2507 = vrcp.f32 %v888_v3  ;;  %v3343_v3 = vld [vmem:[#allocation4 + $0x138] sm:$0xff] }
 0x21c   :  { %v873_v1 = vpop.f32.mrf.mxu0 }
 0x21d   :  { %v891_v62 = vadd.f32 %v3127_v6, %v873_v1  ;;  %v3339_v1 = vld [vmem:[#allocation4 + $0x140] sm:$0xff] }
 0x21e   :  { %v2506_v45 = vpop.eup %2505  ;;  %v2270_v47 = vpop.f32.mrf.mxu0 }
 0x21f   :  { %v892_v15 = vmul.f32 %v2506_v45, %v891_v62  ;;  %v3367_v45 = vld [vmem:[#allocation4 + $0xf0] sm:$0xff]  ;;  %v3375_v47 = vld [vmem:[#allocation4 + $0xd8] sm:$0xff] }
 0x220   :  { %v2508_v38 = vpop.eup %2507 }
 0x221   :  { %v893_v27 = vadd.f32 %v892_v15, %v3806_v5  ;;  %v895_v0 = vsub.f32 1.0, %v2508_v38  ;;  %v897_v25 = vmul.f32 %v2508_v38, %v3131_v44  ;;  %v3383_v15 = vld [vmem:[#allocation4 + $0xc0] sm:$0xff]  ;;  %v3391_v5 = vld [vmem:[#allocation4 + $0xa8] sm:$0xff]  ;;  %v3407_v38 = vld [vmem:[#allocation4 + $0x78] sm:$0xff] }
 0x223   :  { %2509 = vtanh.f32 %v893_v27  ;;  %v3399_v27 = vld [vmem:[#allocation4 + $0x90] sm:$0xff] }
 0x230   :  { %v2510_v21 = vpop.eup %2509 }
 0x231   :  { %v896_v10 = vmul.f32 %v2510_v21, %v895_v0  ;;  %v3415_v0 = vld [vmem:[#allocation4 + $0x60] sm:$0xff]  ;;  %v3423_v21 = vld [vmem:[#allocation4 + $0x48] sm:$0xff] }
 0x233   :  { %v3245_v4 = vadd.f32 %v897_v25, %v896_v10  ;;  %v3431_v10 = vld [vmem:[#allocation4 + $0x30] sm:$0xff]  ;;  %v3439_v25 = vld [vmem:[#allocation4 + $0x18] sm:$0xff] }
 0x235   :  { %970 = vmatmul.mubr.f32.vlgmr.msra.gmra.mxu1 %v3245_v4  ;;  %2304 = vmatmul.mubr.f32.vlgmr.msra.gmra.mxu0 %v3245_v4 }
 0x236   :  { %1075 = vmatpush1.msra.mxu1 %v2793_v7  ;;  %2307 = vmatpush3.msra.mxu0 %v2901_v36  ;;  %v3807_v7 = vld [vmem:[#allocation21_spill] sm:$0xff] }
 0x237   :  { %1076 = vmatprep.subr.mxu1 %v2795_v8  ;;  %2308 = vmatprep.subr.mxu0 %v3797_v63  ;;  %v3808_v8 = vld [vmem:[#allocation19_spill] sm:$0xff] }
 0x238   :  { %1077 = vmatpush1.msra.mxu1 %v2799_v9  ;;  %2309 = vmatpush3.msra.mxu0 %v2923_v42  ;;  %v3809_v9 = vld [vmem:[#allocation20_spill] sm:$0xff] }
 0x239   :  { %1078 = vmatprep.subr.mxu1 %v2806_v11  ;;  %2310 = vmatprep.subr.mxu0 %v3797_v63  ;;  %v3810_v11 = vld [vmem:[#allocation22_spill] sm:$0xff] }
 0x23a   :  { %1079 = vmatpush1.msra.mxu1 %v2809_v12  ;;  %2311 = vmatpush3.msra.mxu0 %v2944_v48  ;;  %v3314_v12 = vld [vmem:[#allocation4 + $0x170] sm:$0xff] }
 0x23b   :  { %1080 = vmatprep.subr.mxu1 %v2812_v13  ;;  %2312 = vmatprep.subr.mxu0 %v3797_v63  ;;  %3811 = vst [vmem:[#allocation17_spill] sm:$0xff] %v3314_v12 }
 0x23c   :  { %1081 = vmatpush1.msra.mxu1 %v2816_v14  ;;  %2313 = vmatpush3.msra.mxu0 %v2957_v51 }
 0x23d   :  { %1082 = vmatprep.subr.mxu1 %v2825_v16  ;;  %2314 = vmatprep.subr.mxu0 %v3797_v63  ;;  %v3812_v16 = vld [vmem:[#allocation25_spill] sm:$0xff] }
 0x23e   :  { %1083 = vmatpush1.msra.mxu1 %v2828_v17  ;;  %2315 = vmatpush3.msra.mxu0 %v2963_v52 }
 0x23f   :  { %1084 = vmatprep.subr.mxu1 %v2831_v18  ;;  %2316 = vmatprep.subr.mxu0 %v3797_v63 }
 0x240   :  { %1085 = vmatpush1.msra.mxu1 %v2839_v20  ;;  %2317 = vmatpush3.msra.mxu0 %v2968_v53 }
 0x241   :  { %1086 = vmatprep.subr.mxu1 %v2848_v22  ;;  %2318 = vmatprep.subr.mxu0 %v3797_v63 }
 0x242   :  { %1087 = vmatpush1.msra.mxu1 %v2851_v23  ;;  %2319 = vmatpush3.msra.mxu0 %v2975_v54  ;;  %v3813_v23 = vld [vmem:[#allocation26_spill] sm:$0xff] }
 0x243   :  { %1088 = vmatprep.subr.mxu1 %v2854_v24  ;;  %2320 = vmatprep.subr.mxu0 %v3797_v63 }
 0x244   :  { %1089 = vmatpush1.msra.mxu1 %v2862_v26  ;;  %2321 = vmatpush3.msra.mxu0 %v2983_v55 }
 0x245   :  { %1090 = vmatprep.subr.mxu1 %v2871_v28  ;;  %2322 = vmatprep.subr.mxu0 %v3797_v63 }
 0x246   :  { %1091 = vmatpush1.msra.mxu1 %v2874_v29  ;;  %2323 = vmatpush3.msra.mxu0 %v2989_v56 }
 0x247   :  { %1092 = vmatprep.subr.mxu1 %v2877_v30  ;;  %2324 = vmatprep.subr.mxu0 %v3797_v63 }
 0x248   :  { %1093 = vmatpush1.msra.mxu1 %v2882_v31  ;;  %2325 = vmatpush3.msra.mxu0 %v2996_v57 }
 0x249   :  { %1094 = vmatprep.subr.mxu1 %v2891_v33  ;;  %2326 = vmatprep.subr.mxu0 %v3797_v63 }
 0x24a   :  { %1095 = vmatpush1.msra.mxu1 %v2894_v34  ;;  %2327 = vmatpush3.msra.mxu0 %v3000_v58 }
 0x24b   :  { %1096 = vmatprep.subr.mxu1 %v2898_v35  ;;  %2328 = vmatprep.subr.mxu0 %v3797_v63 }
 0x24c   :  { %1097 = vmatpush1.msra.mxu1 %v2906_v37  ;;  %2329 = vmatpush3.msra.mxu0 %v3007_v59  ;;  %v3814_v37 = vld [vmem:[#allocation39_spill] sm:$0xff] }
 0x24d   :  { %1098 = vmatprep.subr.mxu1 %v2913_v39  ;;  %2330 = vmatprep.subr.mxu0 %v3797_v63 }
 0x24e   :  { %1099 = vmatpush1.msra.mxu1 %v2916_v40  ;;  %2331 = vmatpush3.msra.mxu0 %v3011_v60 }
 0x24f   :  { %1100 = vmatprep.subr.mxu1 %v2920_v41  ;;  %2332 = vmatprep.subr.mxu0 %v3797_v63 }
 0x250   :  { %1101 = vmatpush1.msra.mxu1 %v2927_v43  ;;  %2333 = vmatpush3.msra.mxu0 %v3015_v61 }
 0x251   :  { %1102 = vmatprep.subr.mxu1 %v3798_v50  ;;  %2334 = vmatprep.subr.mxu0 %v3797_v63  ;;  %v3327_v50 = vld [vmem:[#allocation4 + $0x168] sm:$0xff] }
 0x252   :  { %1103 = vmatpush1.msra.mxu1 %v3799_v19  ;;  %2335 = vmatpush3.msra.mxu0 %v3807_v7  ;;  %v3331_v19 = vld [vmem:[#allocation4 + $0x158] sm:$0xff] }
 0x253   :  { %1104 = vmatprep.subr.mxu1 %v3808_v8  ;;  %2336 = vmatprep.subr.mxu0 %v3797_v63  ;;  %v3817_v8 = vld [vmem:[#allocation27_spill] sm:$0xff] }
 0x254   :  { %1105 = vmatpush1.msra.mxu1 %v3809_v9  ;;  %1138 = vmatprep.mubr.f32.mxu1 %v3797_v63 }
 0x255   :  { %2337 = vmatpush3.msra.mxu0 %v3810_v11  ;;  %2338 = vmatprep.mubr.msk.f32.mxu0 %vm2715_vm1, %v3797_v63 }
 0x256   :  { %1243 = vmatprep.subr.mxu1 %v3314_v12  ;;  %2341 = vmatprep.subr.mxu0 %v3797_v63 }
 0x2f5   :  { %v971_v13 = vpop.f32.mrf.mxu1  ;;  %v1042_v14 = vpop.f32.mrf.mxu0 }
 0x2f6   :  { %v1046_v17 = vadd.f32 %v971_v13, %v3812_v16  ;;  %v1060_v33 = vadd.f32 %v3127_v6, %v1042_v14 }
 0x2f7   :  { %v2305_v18 = vpop.f32.mrf.mxu0  ;;  %v973_v22 = vpop.f32.mrf.mxu1 }
 0x2f8   :  { %v1975_v20 = vmul.f32 -1.442695, %v1046_v17  ;;  %v1053_v24 = vadd.f32 %v973_v22, %v3813_v23  ;;  %v3818_v17 = vld [vmem:[#allocation28_spill] sm:$0xff] }
 0x2fa   :  { %2511 = vpow2.f32 %v1975_v20  ;;  %v1976_v26 = vmul.f32 -1.442695, %v1053_v24 }
 0x2fc   :  { %2513 = vpow2.f32 %v1976_v26 }
 0x307   :  { %v2512_v28 = vpop.eup %2511 }
 0x308   :  { %v1050_v29 = vadd.f32 1.0, %v2512_v28 }
 0x309   :  { %v2514_v30 = vpop.eup %2513 }
 0x30a   :  { %2515 = vrcp.f32 %v1050_v29  ;;  %v1057_v31 = vadd.f32 1.0, %v2514_v30  ;;  %v3819_v30 = vld [vmem:[#allocation38_spill] sm:$0xff] }
 0x30c   :  { %2517 = vrcp.f32 %v1057_v31 }
 0x317   :  { %v2516_v34 = vpop.eup %2515 }
 0x318   :  { %v1061_v35 = vmul.f32 %v2516_v34, %v1060_v33 }
 0x319   :  { %v2518_v40 = vpop.eup %2517 }
 0x31a   :  { %v1062_v39 = vadd.f32 %v1061_v35, %v3814_v37  ;;  %v1064_v41 = vsub.f32 1.0, %v2518_v40  ;;  %v1066_v44 = vmul.f32 %v2518_v40, %v3245_v4  ;;  %v3447_v4 = vld [vmem:[#allocation4] sm:$0xff] }
 0x31b   :  { %3816 = vst [vmem:[#allocation16_spill] sm:$0xff] %v3447_v4 }
 0x31c   :  { %2519 = vtanh.f32 %v1062_v39 }
 0x329   :  { %v2520_v43 = vpop.eup %2519 }
 0x32a   :  { %v1065_v62 = vmul.f32 %v2520_v43, %v1064_v41  ;;  %v3466_v41 = vld [vmem:[#allocation4 + $0x178] sm:$0xff]  ;;  %v3472_v43 = vld [vmem:[#allocation4 + $0x160] sm:$0xff] }
 0x32c   :  { %v3323_v46 = vadd.f32 %v1066_v44, %v1065_v62  ;;  %v3478_v62 = vld [vmem:[#allocation4 + $0x148] sm:$0xff]  ;;  %v3484_v44 = vld [vmem:[#allocation4 + $0x130] sm:$0xff] }
 0x32e   :  { %1139 = vmatmul.mubr.f32.vlgmr.msra.gmra.mxu1 %v3323_v46  ;;  %2339 = vmatmul.mubr.f32.vlgmr.msra.gmra.mxu0 %v3323_v46 }
 0x32f   :  { %1244 = vmatpush1.msra.mxu1 %v3327_v50  ;;  %2342 = vmatpush3.msra.mxu0 %v2901_v36  ;;  %v3347_v36 = vld [vmem:[#allocation4 + $0x128] sm:$0xff] }
 0x330   :  { %1245 = vmatprep.subr.mxu1 %v3331_v19  ;;  %2343 = vmatprep.subr.mxu0 %v3797_v63 }
 0x331   :  { %1246 = vmatpush1.msra.mxu1 %v3335_v2  ;;  %2344 = vmatpush3.msra.mxu0 %v2923_v42  ;;  %v3355_v42 = vld [vmem:[#allocation4 + $0x110] sm:$0xff] }
 0x332   :  { %1247 = vmatprep.subr.mxu1 %v3339_v1  ;;  %2345 = vmatprep.subr.mxu0 %v3797_v63 }
 0x333   :  { %1248 = vmatpush1.msra.mxu1 %v3343_v3  ;;  %2346 = vmatpush3.msra.mxu0 %v2944_v48  ;;  %v3363_v48 = vld [vmem:[#allocation4 + $0xf8] sm:$0xff] }
 0x334   :  { %1249 = vmatprep.subr.mxu1 %v3347_v36  ;;  %2347 = vmatprep.subr.mxu0 %v3797_v63 }
 0x335   :  { %1250 = vmatpush1.msra.mxu1 %v3351_v32  ;;  %2348 = vmatpush3.msra.mxu0 %v2957_v51  ;;  %v3371_v51 = vld [vmem:[#allocation4 + $0xe0] sm:$0xff] }
 0x336   :  { %1251 = vmatprep.subr.mxu1 %v3355_v42  ;;  %2349 = vmatprep.subr.mxu0 %v3797_v63 }
 0x337   :  { %1252 = vmatpush1.msra.mxu1 %v3359_v49  ;;  %2350 = vmatpush3.msra.mxu0 %v2963_v52  ;;  %v3379_v52 = vld [vmem:[#allocation4 + $0xc8] sm:$0xff] }
 0x338   :  { %1253 = vmatprep.subr.mxu1 %v3363_v48  ;;  %2351 = vmatprep.subr.mxu0 %v3797_v63 }
 0x339   :  { %1254 = vmatpush1.msra.mxu1 %v3367_v45  ;;  %2352 = vmatpush3.msra.mxu0 %v2968_v53  ;;  %v3387_v53 = vld [vmem:[#allocation4 + $0xb0] sm:$0xff] }
 0x33a   :  { %1255 = vmatprep.subr.mxu1 %v3371_v51  ;;  %2353 = vmatprep.subr.mxu0 %v3797_v63 }
 0x33b   :  { %1256 = vmatpush1.msra.mxu1 %v3375_v47  ;;  %2354 = vmatpush3.msra.mxu0 %v2975_v54  ;;  %v3395_v54 = vld [vmem:[#allocation4 + $0x98] sm:$0xff] }
 0x33c   :  { %1257 = vmatprep.subr.mxu1 %v3379_v52  ;;  %2355 = vmatprep.subr.mxu0 %v3797_v63 }
 0x33d   :  { %1258 = vmatpush1.msra.mxu1 %v3383_v15  ;;  %2356 = vmatpush3.msra.mxu0 %v2983_v55  ;;  %v3403_v55 = vld [vmem:[#allocation4 + $0x80] sm:$0xff] }
 0x33e   :  { %1259 = vmatprep.subr.mxu1 %v3387_v53  ;;  %2357 = vmatprep.subr.mxu0 %v3797_v63 }
 0x33f   :  { %1260 = vmatpush1.msra.mxu1 %v3391_v5  ;;  %2358 = vmatpush3.msra.mxu0 %v2989_v56  ;;  %v3411_v56 = vld [vmem:[#allocation4 + $0x68] sm:$0xff] }
 0x340   :  { %1261 = vmatprep.subr.mxu1 %v3395_v54  ;;  %2359 = vmatprep.subr.mxu0 %v3797_v63 }
 0x341   :  { %1262 = vmatpush1.msra.mxu1 %v3399_v27  ;;  %2360 = vmatpush3.msra.mxu0 %v2996_v57  ;;  %v3419_v57 = vld [vmem:[#allocation4 + $0x50] sm:$0xff] }
 0x342   :  { %1263 = vmatprep.subr.mxu1 %v3403_v55  ;;  %2361 = vmatprep.subr.mxu0 %v3797_v63 }
 0x343   :  { %1264 = vmatpush1.msra.mxu1 %v3407_v38  ;;  %2362 = vmatpush3.msra.mxu0 %v3000_v58  ;;  %v3427_v58 = vld [vmem:[#allocation4 + $0x38] sm:$0xff] }
 0x344   :  { %1265 = vmatprep.subr.mxu1 %v3411_v56  ;;  %2363 = vmatprep.subr.mxu0 %v3797_v63 }
 0x345   :  { %1266 = vmatpush1.msra.mxu1 %v3415_v0  ;;  %2364 = vmatpush3.msra.mxu0 %v3007_v59  ;;  %v3435_v59 = vld [vmem:[#allocation4 + $0x20] sm:$0xff] }
 0x346   :  { %1267 = vmatprep.subr.mxu1 %v3419_v57  ;;  %2365 = vmatprep.subr.mxu0 %v3797_v63 }
 0x347   :  { %1268 = vmatpush1.msra.mxu1 %v3423_v21  ;;  %2366 = vmatpush3.msra.mxu0 %v3011_v60  ;;  %v3443_v60 = vld [vmem:[#allocation4 + $0x8] sm:$0xff] }
 0x348   :  { %1269 = vmatprep.subr.mxu1 %v3427_v58  ;;  %2367 = vmatprep.subr.mxu0 %v3797_v63  ;;  %3815 = vst [vmem:[#allocation18_spill] sm:$0xff] %v3443_v60 }
 0x349   :  { %1270 = vmatpush1.msra.mxu1 %v3431_v10  ;;  %2368 = vmatpush3.msra.mxu0 %v3015_v61 }
 0x34a   :  { %1271 = vmatprep.subr.mxu1 %v3435_v59  ;;  %2369 = vmatprep.subr.mxu0 %v3797_v63 }
 0x34b   :  { %1272 = vmatpush1.msra.mxu1 %v3439_v25  ;;  %2370 = vmatpush3.msra.mxu0 %v3807_v7 }
 0x34c   :  { %1273 = vmatprep.subr.mxu1 %v3443_v60  ;;  %2371 = vmatprep.subr.mxu0 %v3797_v63 }
 0x34d   :  { %1274 = vmatpush1.msra.mxu1 %v3447_v4  ;;  %1307 = vmatprep.mubr.f32.mxu1 %v3797_v63 }
 0x34e   :  { %2372 = vmatpush3.msra.mxu0 %v3810_v11  ;;  %2373 = vmatprep.mubr.msk.f32.mxu0 %vm2715_vm1, %v3797_v63 }
 0x34f   :  { %1412 = vmatprep.subr.mxu1 %v3314_v12  ;;  %2376 = vmatprep.subr.mxu0 %v3797_v63 }
 0x3ee   :  { %v1140_v61 = vpop.f32.mrf.mxu1  ;;  %v1211_v7 = vpop.f32.mrf.mxu0 }
 0x3ef   :  { %v1215_v9 = vadd.f32 %v1140_v61, %v3817_v8  ;;  %v1229_v26 = vadd.f32 %v3127_v6, %v1211_v7  ;;  %v3496_v61 = vld [vmem:[#allocation4 + $0x100] sm:$0xff]  ;;  %v3502_v7 = vld [vmem:[#allocation4 + $0xe8] sm:$0xff]  ;;  %v3508_v8 = vld [vmem:[#allocation4 + $0xd0] sm:$0xff] }
 0x3f0   :  { %v2340_v13 = vpop.f32.mrf.mxu0  ;;  %v1142_v16 = vpop.f32.mrf.mxu1 }
 0x3f1   :  { %v1977_v14 = vmul.f32 -1.442695, %v1215_v9  ;;  %v1222_v18 = vadd.f32 %v1142_v16, %v3818_v17  ;;  %v3514_v9 = vld [vmem:[#allocation4 + $0xb8] sm:$0xff]  ;;  %v3520_v13 = vld [vmem:[#allocation4 + $0xa0] sm:$0xff]  ;;  %v3532_v16 = vld [vmem:[#allocation4 + $0x70] sm:$0xff] }
 0x3f2   :  { %v3538_v17 = vld [vmem:[#allocation4 + $0x58] sm:$0xff] }
 0x3f3   :  { %2521 = vpow2.f32 %v1977_v14  ;;  %v1978_v20 = vmul.f32 -1.442695, %v1222_v18  ;;  %v3526_v14 = vld [vmem:[#allocation4 + $0x88] sm:$0xff]  ;;  %v3544_v18 = vld [vmem:[#allocation4 + $0x40] sm:$0xff] }
 0x3f5   :  { %2523 = vpow2.f32 %v1978_v20  ;;  %v3550_v20 = vld [vmem:[#allocation4 + $0x28] sm:$0xff] }
 0x3f6   :  { %3820 = vst [vmem:[#allocation23_spill] sm:$0xff] %v3550_v20 }
 0x400   :  { %v2522_v11 = vpop.eup %2521 }
 0x401   :  { %v1219_v22 = vadd.f32 1.0, %v2522_v11  ;;  %v3557_v11 = vld [vmem:[#allocation4 + $0x10] sm:$0xff] }
 0x402   :  { %v2524_v23 = vpop.eup %2523  ;;  %3821 = vst [vmem:[#allocation24_spill] sm:$0xff] %v3557_v11 }
 0x403   :  { %2525 = vrcp.f32 %v1219_v22  ;;  %v1226_v24 = vadd.f32 1.0, %v2524_v23 }
 0x405   :  { %2527 = vrcp.f32 %v1226_v24  ;;  %v3822_v24 = vld [vmem:[#allocation29_spill] sm:$0xff] }
 0x410   :  { %v2526_v28 = vpop.eup %2525 }
 0x411   :  { %v1230_v29 = vmul.f32 %v2526_v28, %v1229_v26 }
 0x412   :  { %v2528_v33 = vpop.eup %2527 }
 0x413   :  { %v1231_v31 = vadd.f32 %v1230_v29, %v3819_v30  ;;  %v1233_v34 = vsub.f32 1.0, %v2528_v33  ;;  %v1235_v39 = vmul.f32 %v2528_v33, %v3323_v46  ;;  %v3490_v46 = vld [vmem:[#allocation4 + $0x118] sm:$0xff] }
 0x415   :  { %2529 = vtanh.f32 %v1231_v31  ;;  %v3823_v31 = vld [vmem:[#allocation30_spill] sm:$0xff] }
 0x422   :  { %v2530_v35 = vpop.eup %2529 }
 0x423   :  { %v1234_v37 = vmul.f32 %v2530_v35, %v1233_v34 }
 0x425   :  { %v3461_v40 = vadd.f32 %v1235_v39, %v1234_v37 }
 0x427   :  { %1308 = vmatmul.mubr.f32.vlgmr.msra.gmra.mxu1 %v3461_v40  ;;  %2374 = vmatmul.mubr.f32.vlgmr.msra.gmra.mxu0 %v3461_v40 }
 0x428   :  { %1413 = vmatpush1.msra.mxu1 %v3327_v50  ;;  %2377 = vmatpush3.msra.mxu0 %v3466_v41 }
 0x429   :  { %1414 = vmatprep.subr.mxu1 %v3331_v19  ;;  %2378 = vmatprep.subr.mxu0 %v3797_v63 }
 0x42a   :  { %1415 = vmatpush1.msra.mxu1 %v3335_v2  ;;  %2379 = vmatpush3.msra.mxu0 %v3472_v43 }
 0x42b   :  { %1416 = vmatprep.subr.mxu1 %v3339_v1  ;;  %2380 = vmatprep.subr.mxu0 %v3797_v63 }
 0x42c   :  { %1417 = vmatpush1.msra.mxu1 %v3343_v3  ;;  %2381 = vmatpush3.msra.mxu0 %v3478_v62 }
 0x42d   :  { %1418 = vmatprep.subr.mxu1 %v3347_v36  ;;  %2382 = vmatprep.subr.mxu0 %v3797_v63 }
 0x42e   :  { %1419 = vmatpush1.msra.mxu1 %v3351_v32  ;;  %2383 = vmatpush3.msra.mxu0 %v3484_v44 }
 0x42f   :  { %1420 = vmatprep.subr.mxu1 %v3355_v42  ;;  %2384 = vmatprep.subr.mxu0 %v3797_v63 }
 0x430   :  { %1421 = vmatpush1.msra.mxu1 %v3359_v49  ;;  %2385 = vmatpush3.msra.mxu0 %v3490_v46 }
 0x431   :  { %1422 = vmatprep.subr.mxu1 %v3363_v48  ;;  %2386 = vmatprep.subr.mxu0 %v3797_v63 }
 0x432   :  { %1423 = vmatpush1.msra.mxu1 %v3367_v45  ;;  %2387 = vmatpush3.msra.mxu0 %v3496_v61 }
 0x433   :  { %1424 = vmatprep.subr.mxu1 %v3371_v51  ;;  %2388 = vmatprep.subr.mxu0 %v3797_v63 }
 0x434   :  { %1425 = vmatpush1.msra.mxu1 %v3375_v47  ;;  %2389 = vmatpush3.msra.mxu0 %v3502_v7 }
 0x435   :  { %1426 = vmatprep.subr.mxu1 %v3379_v52  ;;  %2390 = vmatprep.subr.mxu0 %v3797_v63 }
 0x436   :  { %1427 = vmatpush1.msra.mxu1 %v3383_v15  ;;  %2391 = vmatpush3.msra.mxu0 %v3508_v8 }
 0x437   :  { %1428 = vmatprep.subr.mxu1 %v3387_v53  ;;  %2392 = vmatprep.subr.mxu0 %v3797_v63 }
 0x438   :  { %1429 = vmatpush1.msra.mxu1 %v3391_v5  ;;  %2393 = vmatpush3.msra.mxu0 %v3514_v9 }
 0x439   :  { %1430 = vmatprep.subr.mxu1 %v3395_v54  ;;  %2394 = vmatprep.subr.mxu0 %v3797_v63 }
 0x43a   :  { %1431 = vmatpush1.msra.mxu1 %v3399_v27  ;;  %2395 = vmatpush3.msra.mxu0 %v3520_v13 }
 0x43b   :  { %1432 = vmatprep.subr.mxu1 %v3403_v55  ;;  %2396 = vmatprep.subr.mxu0 %v3797_v63 }
 0x43c   :  { %1433 = vmatpush1.msra.mxu1 %v3407_v38  ;;  %2397 = vmatpush3.msra.mxu0 %v3526_v14 }
 0x43d   :  { %1434 = vmatprep.subr.mxu1 %v3411_v56  ;;  %2398 = vmatprep.subr.mxu0 %v3797_v63 }
 0x43e   :  { %1435 = vmatpush1.msra.mxu1 %v3415_v0  ;;  %2399 = vmatpush3.msra.mxu0 %v3532_v16 }
 0x43f   :  { %1436 = vmatprep.subr.mxu1 %v3419_v57  ;;  %2400 = vmatprep.subr.mxu0 %v3797_v63 }
 0x440   :  { %1437 = vmatpush1.msra.mxu1 %v3423_v21  ;;  %2401 = vmatpush3.msra.mxu0 %v3538_v17 }
 0x441   :  { %1438 = vmatprep.subr.mxu1 %v3427_v58  ;;  %2402 = vmatprep.subr.mxu0 %v3797_v63 }
 0x442   :  { %1439 = vmatpush1.msra.mxu1 %v3431_v10  ;;  %2403 = vmatpush3.msra.mxu0 %v3544_v18 }
 0x443   :  { %1440 = vmatprep.subr.mxu1 %v3435_v59  ;;  %2404 = vmatprep.subr.mxu0 %v3797_v63 }
 0x444   :  { %1441 = vmatpush1.msra.mxu1 %v3439_v25  ;;  %2405 = vmatpush3.msra.mxu0 %v3550_v20  ;;  %v3824_v20 = vld [vmem:[#allocation41_spill] sm:$0xff] }
 0x445   :  { %1442 = vmatprep.subr.mxu1 %v3443_v60  ;;  %2406 = vmatprep.subr.mxu0 %v3797_v63 }
 0x446   :  { %1443 = vmatpush1.msra.mxu1 %v3447_v4  ;;  %1476 = vmatprep.mubr.f32.mxu1 %v3797_v63 }
 0x447   :  { %2407 = vmatpush3.msra.mxu0 %v3557_v11  ;;  %2408 = vmatprep.mubr.msk.f32.mxu0 %vm2715_vm1, %v3797_v63 }
 0x448   :  { %1581 = vmatprep.subr.mxu1 %v3314_v12  ;;  %2411 = vmatprep.subr.mxu0 %v3797_v63 }
 0x4e7   :  { %v1309_v22 = vpop.f32.mrf.mxu1  ;;  %v1380_v23 = vpop.f32.mrf.mxu0 }
 0x4e8   :  { %v1384_v26 = vadd.f32 %v1309_v22, %v3822_v24  ;;  %v1398_v12 = vadd.f32 %v3127_v6, %v1380_v23  ;;  %v3825_v6 = vld [vmem:[#allocation23_spill] sm:$0xff]  ;;  %v3830_v23 = vld [vmem:[#allocation32_spill] sm:$0xff] }
 0x4e9   :  { %v2375_v28 = vpop.f32.mrf.mxu0  ;;  %v1311_v30 = vpop.f32.mrf.mxu1 }
 0x4ea   :  { %v1979_v29 = vmul.f32 -1.442695, %v1384_v26  ;;  %v1391_v33 = vadd.f32 %v1311_v30, %v3823_v31 }
 0x4ec   :  { %2531 = vpow2.f32 %v1979_v29  ;;  %v1980_v34 = vmul.f32 -1.442695, %v1391_v33 }
 0x4ee   :  { %2533 = vpow2.f32 %v1980_v34 }
 0x4f9   :  { %v2532_v35 = vpop.eup %2531 }
 0x4fa   :  { %v1388_v37 = vadd.f32 1.0, %v2532_v35 }
 0x4fb   :  { %v2534_v39 = vpop.eup %2533 }
 0x4fc   :  { %2535 = vrcp.f32 %v1388_v37  ;;  %v1395_v11 = vadd.f32 1.0, %v2534_v39  ;;  %v3831_v39 = vld [vmem:[#allocation33_spill] sm:$0xff] }
 0x4fe   :  { %2537 = vrcp.f32 %v1395_v11 }
 0x509   :  { %v2536_v4 = vpop.eup %2535 }
 0x50a   :  { %v1399_v60 = vmul.f32 %v2536_v4, %v1398_v12  ;;  %v3826_v12 = vld [vmem:[#allocation18_spill] sm:$0xff]  ;;  %v3828_v4 = vld [vmem:[#allocation24_spill] sm:$0xff] }
 0x50b   :  { %v2538_v24 = vpop.eup %2537 }
 0x50c   :  { %v1400_v22 = vadd.f32 %v1399_v60, %v3824_v20  ;;  %v1402_v26 = vsub.f32 1.0, %v2538_v24  ;;  %v1404_v30 = vmul.f32 %v2538_v24, %v3461_v40  ;;  %v3827_v60 = vld [vmem:[#allocation16_spill] sm:$0xff]  ;;  %v3829_v40 = vld [vmem:[#allocation17_spill] sm:$0xff] }
 0x50e   :  { %2539 = vtanh.f32 %v1400_v22 }
 0x51b   :  { %v2540_v28 = vpop.eup %2539 }
 0x51c   :  { %v1403_v29 = vmul.f32 %v2540_v28, %v1402_v26 }
 0x51e   :  { %v3569_v31 = vadd.f32 %v1404_v30, %v1403_v29 }
 0x520   :  { %1477 = vmatmul.mubr.f32.vlgmr.msra.gmra.mxu1 %v3569_v31  ;;  %2409 = vmatmul.mubr.f32.vlgmr.msra.gmra.mxu0 %v3569_v31 }
 0x521   :  { %1582 = vmatpush1.msra.mxu1 %v3327_v50  ;;  %2412 = vmatpush3.msra.mxu0 %v3466_v41 }
 0x522   :  { %1583 = vmatprep.subr.mxu1 %v3331_v19  ;;  %2413 = vmatprep.subr.mxu0 %v3797_v63 }
 0x523   :  { %1584 = vmatpush1.msra.mxu1 %v3335_v2  ;;  %2414 = vmatpush3.msra.mxu0 %v3472_v43 }
 0x524   :  { %1585 = vmatprep.subr.mxu1 %v3339_v1  ;;  %2415 = vmatprep.subr.mxu0 %v3797_v63 }
 0x525   :  { %1586 = vmatpush1.msra.mxu1 %v3343_v3  ;;  %2416 = vmatpush3.msra.mxu0 %v3478_v62 }
 0x526   :  { %1587 = vmatprep.subr.mxu1 %v3347_v36  ;;  %2417 = vmatprep.subr.mxu0 %v3797_v63 }
 0x527   :  { %1588 = vmatpush1.msra.mxu1 %v3351_v32  ;;  %2418 = vmatpush3.msra.mxu0 %v3484_v44 }
 0x528   :  { %1589 = vmatprep.subr.mxu1 %v3355_v42  ;;  %2419 = vmatprep.subr.mxu0 %v3797_v63 }
 0x529   :  { %1590 = vmatpush1.msra.mxu1 %v3359_v49  ;;  %2420 = vmatpush3.msra.mxu0 %v3490_v46 }
 0x52a   :  { %1591 = vmatprep.subr.mxu1 %v3363_v48  ;;  %2421 = vmatprep.subr.mxu0 %v3797_v63 }
 0x52b   :  { %1592 = vmatpush1.msra.mxu1 %v3367_v45  ;;  %2422 = vmatpush3.msra.mxu0 %v3496_v61 }
 0x52c   :  { %1593 = vmatprep.subr.mxu1 %v3371_v51  ;;  %2423 = vmatprep.subr.mxu0 %v3797_v63 }
 0x52d   :  { %1594 = vmatpush1.msra.mxu1 %v3375_v47  ;;  %2424 = vmatpush3.msra.mxu0 %v3502_v7 }
 0x52e   :  { %1595 = vmatprep.subr.mxu1 %v3379_v52  ;;  %2425 = vmatprep.subr.mxu0 %v3797_v63 }
 0x52f   :  { %1596 = vmatpush1.msra.mxu1 %v3383_v15  ;;  %2426 = vmatpush3.msra.mxu0 %v3508_v8 }
 0x530   :  { %1597 = vmatprep.subr.mxu1 %v3387_v53  ;;  %2427 = vmatprep.subr.mxu0 %v3797_v63 }
 0x531   :  { %1598 = vmatpush1.msra.mxu1 %v3391_v5  ;;  %2428 = vmatpush3.msra.mxu0 %v3514_v9 }
 0x532   :  { %1599 = vmatprep.subr.mxu1 %v3395_v54  ;;  %2429 = vmatprep.subr.mxu0 %v3797_v63 }
 0x533   :  { %1600 = vmatpush1.msra.mxu1 %v3399_v27  ;;  %2430 = vmatpush3.msra.mxu0 %v3520_v13 }
 0x534   :  { %1601 = vmatprep.subr.mxu1 %v3403_v55  ;;  %2431 = vmatprep.subr.mxu0 %v3797_v63 }
 0x535   :  { %1602 = vmatpush1.msra.mxu1 %v3407_v38  ;;  %2432 = vmatpush3.msra.mxu0 %v3526_v14 }
 0x536   :  { %1603 = vmatprep.subr.mxu1 %v3411_v56  ;;  %2433 = vmatprep.subr.mxu0 %v3797_v63 }
 0x537   :  { %1604 = vmatpush1.msra.mxu1 %v3415_v0  ;;  %2434 = vmatpush3.msra.mxu0 %v3532_v16 }
 0x538   :  { %1605 = vmatprep.subr.mxu1 %v3419_v57  ;;  %2435 = vmatprep.subr.mxu0 %v3797_v63 }
 0x539   :  { %1606 = vmatpush1.msra.mxu1 %v3423_v21  ;;  %2436 = vmatpush3.msra.mxu0 %v3538_v17 }
 0x53a   :  { %1607 = vmatprep.subr.mxu1 %v3427_v58  ;;  %2437 = vmatprep.subr.mxu0 %v3797_v63 }
 0x53b   :  { %1608 = vmatpush1.msra.mxu1 %v3431_v10  ;;  %2438 = vmatpush3.msra.mxu0 %v3544_v18 }
 0x53c   :  { %1609 = vmatprep.subr.mxu1 %v3435_v59  ;;  %2439 = vmatprep.subr.mxu0 %v3797_v63 }
 0x53d   :  { %1610 = vmatpush1.msra.mxu1 %v3439_v25  ;;  %2440 = vmatpush3.msra.mxu0 %v3825_v6 }
 0x53e   :  { %1611 = vmatprep.subr.mxu1 %v3826_v12  ;;  %2441 = vmatprep.subr.mxu0 %v3797_v63 }
 0x53f   :  { %1612 = vmatpush1.msra.mxu1 %v3827_v60  ;;  %1645 = vmatprep.mubr.f32.mxu1 %v3797_v63 }
 0x540   :  { %2442 = vmatpush3.msra.mxu0 %v3828_v4  ;;  %2443 = vmatprep.mubr.msk.f32.mxu0 %vm2715_vm1, %v3797_v63 }
 0x541   :  { %1750 = vmatprep.subr.mxu1 %v3829_v40  ;;  %2446 = vmatprep.subr.mxu0 %v3797_v63  ;;  %v3645_v40 = vld [vmem:[%s3739_s5] ss:$0 sm:$0xff]  ;;  %s2716_s5 = smov [#allocation9]  }
 0x542   :  { %s1922_s10 = sshll.u32 %s2716_s5, 4  ;;  %s1923_s10 = int_to_ptr.vmem [resolvable:$true] %s1922_s10 }
 0x543   :  { %s2660_s11 = scalar_lea.vmem %s1923_s10, 128  ;;  %p2665_p11 = scmp.lt.s32.totalorder %s1923_s10, %s1923_s10 }
 0x544   :  { %p2661_p10 = scmp.ne.s32.totalorder %s1923_s10, %s2660_s11  ;;  %p2666_p12 = scmp.lt.s32.totalorder %s2660_s11, %s2660_s11 }
 0x546   :  { %p2667_p13 = por %p2666_p12, %p2665_p11 }
 0x548   :  { %p2668_p0 = pnand %p2667_p13, %p2661_p10 }
 0x5e0   :  { %v1478_v20 = vpop.f32.mrf.mxu1  ;;  %v1549_v11 = vpop.f32.mrf.mxu0 }
 0x5e1   :  { %v1553_v33 = vadd.f32 %v1478_v20, %v3830_v23  ;;  %v1567_v20 = vadd.f32 %v3645_v40, %v1549_v11 }
 0x5e2   :  { %v2410_v34 = vpop.f32.mrf.mxu0  ;;  %v1480_v37 = vpop.f32.mrf.mxu1 }
 0x5e3   :  { %v1981_v35 = vmul.f32 -1.442695, %v1553_v33  ;;  %v1560_v22 = vadd.f32 %v1480_v37, %v3831_v39  ;;  %v3832_v34 = vld [vmem:[#allocation40_spill] sm:$0xff] }
 0x5e5   :  { %2541 = vpow2.f32 %v1981_v35  ;;  %v1982_v24 = vmul.f32 -1.442695, %v1560_v22 }
 0x5e7   :  { %2543 = vpow2.f32 %v1982_v24 }
 0x5f2   :  { %v2542_v26 = vpop.eup %2541 }
 0x5f3   :  { %v1557_v28 = vadd.f32 1.0, %v2542_v26 }
 0x5f4   :  { %v2544_v29 = vpop.eup %2543 }
 0x5f5   :  { %2545 = vrcp.f32 %v1557_v28  ;;  %v1564_v30 = vadd.f32 1.0, %v2544_v29 }
 0x5f7   :  { %2547 = vrcp.f32 %v1564_v30 }
 0x602   :  { %v2546_v23 = vpop.eup %2545 }
 0x603   :  { %v1568_v33 = vmul.f32 %v2546_v23, %v1567_v20 }
 0x604   :  { %v2548_v37 = vpop.eup %2547 }
 0x605   :  { %v1569_v35 = vadd.f32 %v1568_v33, %v3832_v34  ;;  %v1571_v39 = vsub.f32 1.0, %v2548_v37  ;;  %v1573_v26 = vmul.f32 %v2548_v37, %v3569_v31 }
 0x607   :  { %2549 = vtanh.f32 %v1569_v35 }
 0x614   :  { %v2550_v22 = vpop.eup %2549 }
 0x615   :  { %v1572_v24 = vmul.f32 %v2550_v22, %v1571_v39 }
 0x617   :  { %v3650_v28 = vadd.f32 %v1573_v26, %v1572_v24 }
 0x619   :  { %1646 = vmatmul.mubr.f32.vlgmr.msra.gmra.mxu1 %v3650_v28  ;;  %2444 = vmatmul.mubr.f32.vlgmr.msra.gmra.mxu0 %v3650_v28 }
 0x61a   :  { %1751 = vmatpush1.msra.mxu1 %v3327_v50  ;;  %2447 = vmatpush3.msra.mxu0 %v3466_v41 }
 0x61b   :  { %1752 = vmatprep.subr.mxu1 %v3331_v19  ;;  %2448 = vmatprep.subr.mxu0 %v3797_v63 }
 0x61c   :  { %1753 = vmatpush1.msra.mxu1 %v3335_v2  ;;  %2449 = vmatpush3.msra.mxu0 %v3472_v43  ;;  %v3833_v2 = vld [vmem:[#allocation34_spill] sm:$0xff] }
 0x61d   :  { %1754 = vmatprep.subr.mxu1 %v3339_v1  ;;  %2450 = vmatprep.subr.mxu0 %v3797_v63 }
 0x61e   :  { %1755 = vmatpush1.msra.mxu1 %v3343_v3  ;;  %2451 = vmatpush3.msra.mxu0 %v3478_v62 }
 0x61f   :  { %1756 = vmatprep.subr.mxu1 %v3347_v36  ;;  %2452 = vmatprep.subr.mxu0 %v3797_v63 }
 0x620   :  { %1757 = vmatpush1.msra.mxu1 %v3351_v32  ;;  %2453 = vmatpush3.msra.mxu0 %v3484_v44 }
 0x621   :  { %1758 = vmatprep.subr.mxu1 %v3355_v42  ;;  %2454 = vmatprep.subr.mxu0 %v3797_v63  ;;  %v3834_v42 = vld [vmem:[#allocation35_spill] sm:$0xff] }
 0x622   :  { %1759 = vmatpush1.msra.mxu1 %v3359_v49  ;;  %2455 = vmatpush3.msra.mxu0 %v3490_v46 }
 0x623   :  { %1760 = vmatprep.subr.mxu1 %v3363_v48  ;;  %2456 = vmatprep.subr.mxu0 %v3797_v63 }
 0x624   :  { %1761 = vmatpush1.msra.mxu1 %v3367_v45  ;;  %2457 = vmatpush3.msra.mxu0 %v3496_v61 }
 0x625   :  { %1762 = vmatprep.subr.mxu1 %v3371_v51  ;;  %2458 = vmatprep.subr.mxu0 %v3797_v63 }
 0x626   :  { %1763 = vmatpush1.msra.mxu1 %v3375_v47  ;;  %2459 = vmatpush3.msra.mxu0 %v3502_v7 }
 0x627   :  { %1764 = vmatprep.subr.mxu1 %v3379_v52  ;;  %2460 = vmatprep.subr.mxu0 %v3797_v63 }
 0x628   :  { %1765 = vmatpush1.msra.mxu1 %v3383_v15  ;;  %2461 = vmatpush3.msra.mxu0 %v3508_v8 }
 0x629   :  { %1766 = vmatprep.subr.mxu1 %v3387_v53  ;;  %2462 = vmatprep.subr.mxu0 %v3797_v63 }
 0x62a   :  { %1767 = vmatpush1.msra.mxu1 %v3391_v5  ;;  %2463 = vmatpush3.msra.mxu0 %v3514_v9  ;;  %v3835_v5 = vld [vmem:[#allocation43_spill] sm:$0xff] }
 0x62b   :  { %1768 = vmatprep.subr.mxu1 %v3395_v54  ;;  %2464 = vmatprep.subr.mxu0 %v3797_v63 }
 0x62c   :  { %1769 = vmatpush1.msra.mxu1 %v3399_v27  ;;  %2465 = vmatpush3.msra.mxu0 %v3520_v13 }
 0x62d   :  { %1770 = vmatprep.subr.mxu1 %v3403_v55  ;;  %2466 = vmatprep.subr.mxu0 %v3797_v63 }
 0x62e   :  { %1771 = vmatpush1.msra.mxu1 %v3407_v38  ;;  %2467 = vmatpush3.msra.mxu0 %v3526_v14 }
 0x62f   :  { %1772 = vmatprep.subr.mxu1 %v3411_v56  ;;  %2468 = vmatprep.subr.mxu0 %v3797_v63 }
 0x630   :  { %1773 = vmatpush1.msra.mxu1 %v3415_v0  ;;  %2469 = vmatpush3.msra.mxu0 %v3532_v16 }
 0x631   :  { %1774 = vmatprep.subr.mxu1 %v3419_v57  ;;  %2470 = vmatprep.subr.mxu0 %v3797_v63 }
 0x632   :  { %1775 = vmatpush1.msra.mxu1 %v3423_v21  ;;  %2471 = vmatpush3.msra.mxu0 %v3538_v17 }
 0x633   :  { %1776 = vmatprep.subr.mxu1 %v3427_v58  ;;  %2472 = vmatprep.subr.mxu0 %v3797_v63 }
 0x634   :  { %1777 = vmatpush1.msra.mxu1 %v3431_v10  ;;  %2473 = vmatpush3.msra.mxu0 %v3544_v18 }
 0x635   :  { %1778 = vmatprep.subr.mxu1 %v3435_v59  ;;  %2474 = vmatprep.subr.mxu0 %v3797_v63 }
 0x636   :  { %1779 = vmatpush1.msra.mxu1 %v3439_v25  ;;  %2475 = vmatpush3.msra.mxu0 %v3825_v6 }
 0x637   :  { %1780 = vmatprep.subr.mxu1 %v3826_v12  ;;  %2476 = vmatprep.subr.mxu0 %v3797_v63 }
 0x638   :  { %1781 = vmatpush1.msra.mxu1 %v3827_v60  ;;  %1814 = vmatprep.mubr.f32.mxu1 %v3797_v63 }
 0x639   :  { %2477 = vmatpush3.msra.mxu0 %v3828_v4  ;;  %2478 = vmatprep.mubr.msk.f32.mxu0 %vm2715_vm1, %v3797_v63 }
 0x6d9   :  { %v1647_v50 = vpop.f32.mrf.mxu1  ;;  %v1718_v19 = vpop.f32.mrf.mxu0 }
 0x6da   :  { %v1722_v1 = vadd.f32 %v1647_v50, %v3833_v2  ;;  %v1736_v15 = vadd.f32 %v3645_v40, %v1718_v19 }
 0x6db   :  { %v2445_v3 = vpop.f32.mrf.mxu0  ;;  %v1649_v32 = vpop.f32.mrf.mxu1 }
 0x6dc   :  { %v1983_v36 = vmul.f32 -1.442695, %v1722_v1  ;;  %v1729_v49 = vadd.f32 %v1649_v32, %v3834_v42 }
 0x6de   :  { %2551 = vpow2.f32 %v1983_v36  ;;  %v1984_v48 = vmul.f32 -1.442695, %v1729_v49 }
 0x6e0   :  { %2553 = vpow2.f32 %v1984_v48 }
 0x6eb   :  { %v2552_v45 = vpop.eup %2551 }
 0x6ec   :  { %v1726_v51 = vadd.f32 1.0, %v2552_v45 }
 0x6ed   :  { %v2554_v47 = vpop.eup %2553 }
 0x6ee   :  { %2555 = vrcp.f32 %v1726_v51  ;;  %v1733_v52 = vadd.f32 1.0, %v2554_v47 }
 0x6f0   :  { %2557 = vrcp.f32 %v1733_v52 }
 0x6fb   :  { %v2556_v63 = vpop.eup %2555 }
 0x6fc   :  { %v1737_v53 = vmul.f32 %v2556_v63, %v1736_v15 }
 0x6fd   :  { %v2558_v27 = vpop.eup %2557 }
 0x6fe   :  { %v1738_v54 = vadd.f32 %v1737_v53, %v3835_v5  ;;  %v1740_v55 = vsub.f32 1.0, %v2558_v27  ;;  %v1742_v0 = vmul.f32 %v2558_v27, %v3650_v28 }
 0x700   :  { %2559 = vtanh.f32 %v1738_v54 }
 0x70d   :  { %v2560_v38 = vpop.eup %2559 }
 0x70e   :  { %v1741_v56 = vmul.f32 %v2560_v38, %v1740_v55 }
 0x710   :  { %v1743_v57 = vadd.f32 %v1742_v0, %v1741_v56 }
 0x712   :  { %1815 = vmatmul.mubr.f32.vlgmr.msra.gmra.mxu1 %v1743_v57  ;;  %2479 = vmatmul.mubr.f32.vlgmr.msra.gmra.mxu0 %v1743_v57 }
 0x713   :  { %2671 = shalt.err (!%p2668_p0)
}
 0x714   :  { %1925 = dma.vmem_to_hbm [thread:$0]  %s1923_s10, 128, %s3742_s8, [#allocation6]   ;;  %v3836_v10 = vld [vmem:[#allocation36_spill] sm:$0xff]  ;;  %v3837_v62 = vld [vmem:[#allocation37_spill] sm:$0xff]  ;;  %v3838_v17 = vld [vmem:[#allocation42_spill] sm:$0xff] }
 0x715   :  { %s2717_s8 = smov [#allocation10]  }
 0x716   :  { %s1932_s14 = sshll.u32 %s2717_s8, 4  ;;  %s1933_s14 = int_to_ptr.vmem [resolvable:$true] %s1932_s14 }
 0x717   :  { %s2680_s15 = scalar_lea.vmem %s1933_s14, 128  ;;  %p2685_p2 = scmp.lt.s32.totalorder %s1933_s14, %s1933_s14 }
 0x718   :  { %p2681_p1 = scmp.ne.s32.totalorder %s1933_s14, %s2680_s15  ;;  %p2686_p3 = scmp.lt.s32.totalorder %s2680_s15, %s2680_s15 }
 0x71a   :  { %p2687_p4 = por %p2686_p3, %p2685_p2 }
 0x71c   :  { %p2688_p5 = pnand %p2687_p4, %p2681_p1 }
 0x7d2   :  { %v1816_v21 = vpop.f32.mrf.mxu1  ;;  %v1887_v58 = vpop.f32.mrf.mxu0 }
 0x7d3   :  { %v1891_v59 = vadd.f32 %v1816_v21, %v3836_v10  ;;  %v1905_v13 = vadd.f32 %v3645_v40, %v1887_v58 }
 0x7d4   :  { %v2480_v25 = vpop.f32.mrf.mxu0  ;;  %v1818_v43 = vpop.f32.mrf.mxu1 }
 0x7d5   :  { %v1985_v41 = vmul.f32 -1.442695, %v1891_v59  ;;  %v1898_v44 = vadd.f32 %v1818_v43, %v3837_v62 }
 0x7d7   :  { %2561 = vpow2.f32 %v1985_v41  ;;  %v1986_v46 = vmul.f32 -1.442695, %v1898_v44 }
 0x7d9   :  { %2563 = vpow2.f32 %v1986_v46 }
 0x7e4   :  { %v2562_v61 = vpop.eup %2561 }
 0x7e5   :  { %v1895_v7 = vadd.f32 1.0, %v2562_v61 }
 0x7e6   :  { %v2564_v8 = vpop.eup %2563 }
 0x7e7   :  { %2565 = vrcp.f32 %v1895_v7  ;;  %v1902_v9 = vadd.f32 1.0, %v2564_v8 }
 0x7e9   :  { %2567 = vrcp.f32 %v1902_v9 }
 0x7f4   :  { %v2566_v14 = vpop.eup %2565 }
 0x7f5   :  { %v1906_v16 = vmul.f32 %v2566_v14, %v1905_v13 }
 0x7f6   :  { %v2568_v31 = vpop.eup %2567 }
 0x7f7   :  { %v1907_v18 = vadd.f32 %v1906_v16, %v3838_v17  ;;  %v1909_v6 = vsub.f32 1.0, %v2568_v31  ;;  %v1911_v4 = vmul.f32 %v2568_v31, %v1743_v57 }
 0x7f9   :  { %2569 = vtanh.f32 %v1907_v18 }
 0x806   :  { %v2570_v12 = vpop.eup %2569 }
 0x807   :  { %v1910_v60 = vmul.f32 %v2570_v12, %v1909_v6 }
 0x809   :  { %v1912_v11 = vadd.f32 %v1911_v4, %v1910_v60 }
 0x80b   :  { %1915 = vst [vmem:[#allocation10] sm:$0xff] %v1912_v11 }
 0x80c   :  { %2691 = shalt.err (!%p2688_p5)
}
 0x80d   :  { %1935 = dma.vmem_to_hbm [thread:$0]  %s1933_s14, 128, %s3743_s9, [#allocation11]  }
 0x80e   :  { %2704 = dma.done.wait [#allocation6], 128  }
 0x80f   :  { %2705 = vsyncadd [#allocation6], 4294967168 }
 0x810   :  { %2706 = dma.done.wait [#allocation11], 128  }
 0x811   :  { %2707 = vsyncadd [#allocation11], 4294967168 }
 0x812   :  { %1942 = vsyncpa [#allocation5], 1 }
 0x813   :  { %1943 = vsyncpa [#allocation8], 1 }
 0x814   :  { %1944 = vsyncpa [#allocation6], 1 }
 0x815   :  { %1945 = vsyncpa [#allocation11], 1 }

</bundles_post_ra>
